<compile_context>
chip_gen: v6e
topology: v6e:2x2x1
jax: 0.10.0
libtpu: 0.0.40
codegen_flags: <defaults>
</compile_context>

<pallas_src>
import numpy as np
import jax
import jax.numpy as jnp
from jax.experimental import pallas as pl
from jax.experimental.pallas import tpu as pltpu


# ----------------------------------------------------------------------------
# Fused kernel: 4 RGCN layers + user/item selection + MLP head + log_softmax.
# No grid; everything lives in VMEM for the duration of the call.
# ----------------------------------------------------------------------------
def _igmc2_fused_kernel(x_ref, adj_ref, selu_ref, seli_ref,
                        wrel0_ref, wroot0_ref, bias0_ref,
                        wrel_ref, wroot_ref, bias_ref,
                        w1_ref, b1_ref, w2_ref, b2_ref,
                        out_ref):
    R = adj_ref.shape[0]

    def rgcn(h, wrel_flat, wroot, bias):
        # Per-relation neighbour aggregation, lane-stacked: [N, R*Fin].
        ax = jnp.concatenate(
            [jnp.dot(adj_ref[r], h, preferred_element_type=jnp.float32)
             for r in range(R)],
            axis=-1)
        # Single K = R*Fin MXU matmul replaces R per-relation weight matmuls.
        msg = jnp.dot(ax, wrel_flat, preferred_element_type=jnp.float32)
        root = jnp.dot(h, wroot, preferred_element_type=jnp.float32)
        return jnp.tanh(root + bias + msg)

    # Layer 0 (Fin = num_features), then the stacked layers 1..3 (Fin = 32).
    h = rgcn(x_ref[...], wrel0_ref[...], wroot0_ref[...], bias0_ref[...])
    outs = [h]
    for li in range(wrel_ref.shape[0]):
        h = rgcn(h, wrel_ref[li], wroot_ref[li], bias_ref[li])
        outs.append(h)

    # Lane-dense [N, 128] concat slab, built in registers (no partial stores).
    slab = jnp.concatenate(outs, axis=-1)

    # Fused user/item row selection as one-hot matmuls: [G, N] @ [N, 128].
    hu = jnp.dot(selu_ref[...], slab, preferred_element_type=jnp.float32)
    hi = jnp.dot(seli_ref[...], slab, preferred_element_type=jnp.float32)
    feat = jnp.concatenate([hu, hi], axis=-1)            # [G, 256]

    # MLP head (F.dropout(p=0.5) is identity in eval mode) + log_softmax.
    z = jnp.dot(feat, w1_ref[...], preferred_element_type=jnp.float32) + b1_ref[...]
    z = jnp.maximum(z, 0.0)
    logits = jnp.dot(z, w2_ref[...], preferred_element_type=jnp.float32) + b2_ref[...]
    m = jnp.max(logits, axis=-1, keepdims=True)
    s = logits - m
    out_ref[...] = s - jnp.log(jnp.sum(jnp.exp(s), axis=-1, keepdims=True))


def igmc2_forward(x, adj, params, sel_u, sel_i):
    """x: [N, F] f32, adj: [R, N, N] f32, sel_u/sel_i: [G, N] one-hot f32.
    Returns log-probabilities [G, num_classes]."""
    convs = params["convs"]

    # Flatten per-relation weights [R, Fin, Fout] -> [R*Fin, Fout] so the kernel
    # can contract all relations with one matmul. Layer 0 has a different Fin,
    # so it stays separate; layers 1..3 share shapes and are stacked.
    def flat(w):
        return w.reshape(-1, w.shape[-1])

    wrel0, wroot0, bias0 = flat(convs[0]["w_rel"]), convs[0]["w_root"], convs[0]["bias"]
    wrel123 = jnp.stack([flat(c["w_rel"]) for c in convs[1:]])     # [3, R*32, 32]
    wroot123 = jnp.stack([c["w_root"] for c in convs[1:]])         # [3, 32, 32]
    bias123 = jnp.stack([c["bias"] for c in convs[1:]])            # [3, 1, 32]

    G = sel_u.shape[0]
    C = params["w2"].shape[1]
    vmem = pl.BlockSpec(memory_space=pltpu.MemorySpace.VMEM)

    return pl.pallas_call(
        _igmc2_fused_kernel,
        out_shape=jax.ShapeDtypeStruct((G, C), jnp.float32),
        in_specs=[vmem] * 14,
        out_specs=vmem,
    )(x, adj, sel_u, sel_i,
      wrel0, wroot0, bias0,
      wrel123, wroot123, bias123,
      params["w1"], params["b1"], params["w2"], params["b2"])


# ----------------------------------------------------------------------------
# Pure-JAX reference (for correctness checking only).
# ----------------------------------------------------------------------------
def igmc2_reference(x, adj, params, user_idx, item_idx):
    R = adj.shape[0]
    h = x
    outs = []
    for layer in params["convs"]:
        msg = sum(adj[r] @ h @ layer["w_rel"][r] for r in range(R))
        h = jnp.tanh(h @ layer["w_root"] + layer["bias"] + msg)
        outs.append(h)
    cs = jnp.concatenate(outs, axis=1)
    feat = jnp.concatenate([cs[user_idx], cs[item_idx]], axis=1)
    z = jax.nn.relu(feat @ params["w1"] + params["b1"])
    logits = z @ params["w2"] + params["b2"]
    return jax.nn.log_softmax(logits, axis=-1)


# ----------------------------------------------------------------------------
# Parameter / input construction (deterministic, synthetic).
# ----------------------------------------------------------------------------
def make_params(key, num_features, latent_dim, num_relations, num_bases,
                num_classes):
    params = {"convs": []}
    in_dims = [num_features] + latent_dim[:-1]
    for fin, fout in zip(in_dims, latent_dim):
        key, k1, k2, k3, k4 = jax.random.split(key, 5)
        basis = jax.random.normal(k1, (num_bases, fin, fout), jnp.float32) * 0.2
        att = jax.random.normal(k2, (num_relations, num_bases), jnp.float32) * 0.5
        # basis-decomposed per-relation weights: W_r = sum_b att[r,b] * basis[b]
        w_rel = jnp.einsum("rb,bio->rio", att, basis)
        w_root = jax.random.normal(k3, (fin, fout), jnp.float32) * 0.2
        bias = jax.random.normal(k4, (1, fout), jnp.float32) * 0.1
        params["convs"].append({"w_rel": w_rel, "w_root": w_root, "bias": bias})

    d_cat = 2 * sum(latent_dim)  # lin1 input (side_features=False)
    key, k1, k2, k3, k4 = jax.random.split(key, 5)
    params["w1"] = jax.random.normal(k1, (d_cat, 128), jnp.float32) * 0.1
    params["b1"] = jax.random.normal(k2, (1, 128), jnp.float32) * 0.1
    params["w2"] = jax.random.normal(k3, (128, num_classes), jnp.float32) * 0.1
    params["b2"] = jax.random.normal(k4, (1, num_classes), jnp.float32) * 0.1
    return params


def make_graph(num_nodes, num_features, num_relations, num_edges, users, items):
    """Node features (one-hot labels; col0==1 marks user, col1==1 marks item) and
    the dense per-relation adjacency [R, N, N], mean-normalized PER RELATION
    (PyG RGCNConv aggr='mean' semantics: each relation's messages are averaged
    over that relation's own in-degree before summing across relations)."""
    rng = np.random.RandomState(0)
    x = np.zeros((num_nodes, num_features), np.float32)
    for n in range(num_nodes):
        if n in users:
            x[n, 0] = 1.0
        elif n in items:
            x[n, 1] = 1.0
        else:
            x[n, 2 + rng.randint(num_features - 2)] = 1.0

    src = rng.randint(0, num_nodes, size=num_edges)
    dst = rng.randint(0, num_nodes, size=num_edges)
    etype = rng.randint(0, num_relations, size=num_edges)

    # NOTE: dropout_adj(p=0.2) applies only in training; eval -> identity (skipped).
    adj = np.zeros((num_relations, num_nodes, num_nodes), np.float32)
    for e in range(num_edges):
        adj[etype[e], dst[e], src[e]] += 1.0
    deg = adj.sum(axis=2, keepdims=True)          # per-relation in-degree per dst
    adj = adj / np.maximum(deg, 1.0)              # scatter_mean: 0-deg -> 0

    return jnp.asarray(x), jnp.asarray(adj)


if __name__ == "__main__":
    # Small shapes consistent with IGMC2's forward.
    NUM_NODES = 16          # nodes in the batched subgraphs
    NUM_FEATURES = 4        # dataset.num_features (one-hot node labels)
    NUM_RELATIONS = 5
    NUM_BASES = 5
    LATENT_DIM = [32, 32, 32, 32]
    NUM_CLASSES = 5         # dataset.num_classes
    NUM_EDGES = 48
    USERS = [0, 8]          # one user + one item per enclosing subgraph
    ITEMS = [1, 9]

    key = jax.random.PRNGKey(0)
    params = make_params(key, NUM_FEATURES, LATENT_DIM, NUM_RELATIONS,
                         NUM_BASES, NUM_CLASSES)
    x, adj = make_graph(NUM_NODES, NUM_FEATURES, NUM_RELATIONS, NUM_EDGES,
                        USERS, ITEMS)

    # users = data.x[:,0]==1, items = data.x[:,1]==1  (host-side boolean masks),
    # materialized as one-hot selection matrices for the fused in-kernel gather.
    x_np = np.asarray(x)
    user_idx = np.nonzero(x_np[:, 0] == 1.0)[0]
    item_idx = np.nonzero(x_np[:, 1] == 1.0)[0]
    G = len(user_idx)
    sel_u = np.zeros((G, NUM_NODES), np.float32)
    sel_i = np.zeros((G, NUM_NODES), np.float32)
    sel_u[np.arange(G), user_idx] = 1.0
    sel_i[np.arange(G), item_idx] = 1.0
    sel_u, sel_i = jnp.asarray(sel_u), jnp.asarray(sel_i)

    out = igmc2_forward(x, adj, params, sel_u, sel_i)
    out = jax.block_until_ready(out)

    assert out.shape == (G, NUM_CLASSES)
    # log_softmax rows must (approximately) exp-sum to 1
    assert np.allclose(np.exp(np.asarray(out)).sum(axis=-1), 1.0, atol=1e-4)

    # Cross-check against the pure-JAX reference implementation.
    ref = jax.block_until_ready(
        igmc2_reference(x, adj, params,
                        jnp.asarray(user_idx, jnp.int32),
                        jnp.asarray(item_idx, jnp.int32)))
    assert np.allclose(np.asarray(out), np.asarray(ref), atol=1e-4, rtol=1e-4)

    print("KERNEL_OK")
</pallas_src>

<mosaic_0001>
module attributes {stable_mosaic.version = 11 : i64} {
  func.func @_igmc2_fused_kernel(%arg0: memref<16x4xf32, #tpu.memory_space<vmem>>, %arg1: memref<5x16x16xf32, #tpu.memory_space<vmem>>, %arg2: memref<2x16xf32, #tpu.memory_space<vmem>>, %arg3: memref<2x16xf32, #tpu.memory_space<vmem>>, %arg4: memref<20x32xf32, #tpu.memory_space<vmem>>, %arg5: memref<4x32xf32, #tpu.memory_space<vmem>>, %arg6: memref<1x32xf32, #tpu.memory_space<vmem>>, %arg7: memref<3x160x32xf32, #tpu.memory_space<vmem>>, %arg8: memref<3x32x32xf32, #tpu.memory_space<vmem>>, %arg9: memref<3x1x32xf32, #tpu.memory_space<vmem>>, %arg10: memref<256x128xf32, #tpu.memory_space<vmem>>, %arg11: memref<1x128xf32, #tpu.memory_space<vmem>>, %arg12: memref<128x5xf32, #tpu.memory_space<vmem>>, %arg13: memref<1x5xf32, #tpu.memory_space<vmem>>, %arg14: memref<2x5xf32, #tpu.memory_space<vmem>>) attributes {dimension_semantics = [], scalar_prefetch = 0 : i64, scratch_operands = 0 : i64, tpu.core_type = #tpu.core_type<tc>} {
    %c0 = arith.constant 0 : index
    %c0_0 = arith.constant 0 : index
    %0 = vector.load %arg0[%c0, %c0_0] : memref<16x4xf32, #tpu.memory_space<vmem>>, vector<16x4xf32>
    %c0_1 = arith.constant 0 : index
    %c0_2 = arith.constant 0 : index
    %1 = vector.load %arg4[%c0_1, %c0_2] : memref<20x32xf32, #tpu.memory_space<vmem>>, vector<20x32xf32>
    %c0_3 = arith.constant 0 : index
    %c0_4 = arith.constant 0 : index
    %2 = vector.load %arg5[%c0_3, %c0_4] : memref<4x32xf32, #tpu.memory_space<vmem>>, vector<4x32xf32>
    %c0_5 = arith.constant 0 : index
    %c0_6 = arith.constant 0 : index
    %3 = vector.load %arg6[%c0_5, %c0_6] : memref<1x32xf32, #tpu.memory_space<vmem>>, vector<1x32xf32>
    %c0_7 = arith.constant 0 : index
    %c0_8 = arith.constant 0 : index
    %c0_9 = arith.constant 0 : index
    %4 = vector.load %arg1[%c0_7, %c0_8, %c0_9] : memref<5x16x16xf32, #tpu.memory_space<vmem>>, vector<1x16x16xf32>
    %5 = vector.shape_cast %4 : vector<1x16x16xf32> to vector<16x16xf32>
    %cst = arith.constant dense<0.000000e+00> : vector<16x4xf32>
    %6 = tpu.matmul %5, %0, %cst {dimension_numbers = #tpu.dot_dimension_numbers<[1], [0], [0], [1], [0, 0, 1, 1], [], []>} : vector<16x16xf32>, vector<16x4xf32>, vector<16x4xf32> -> vector<16x4xf32>
    %c1 = arith.constant 1 : index
    %c0_10 = arith.constant 0 : index
    %c0_11 = arith.constant 0 : index
    %7 = vector.load %arg1[%c1, %c0_10, %c0_11] : memref<5x16x16xf32, #tpu.memory_space<vmem>>, vector<1x16x16xf32>
    %8 = vector.shape_cast %7 : vector<1x16x16xf32> to vector<16x16xf32>
    %cst_12 = arith.constant dense<0.000000e+00> : vector<16x4xf32>
    %9 = tpu.matmul %8, %0, %cst_12 {dimension_numbers = #tpu.dot_dimension_numbers<[1], [0], [0], [1], [0, 0, 1, 1], [], []>} : vector<16x16xf32>, vector<16x4xf32>, vector<16x4xf32> -> vector<16x4xf32>
    %c2 = arith.constant 2 : index
    %c0_13 = arith.constant 0 : index
    %c0_14 = arith.constant 0 : index
    %10 = vector.load %arg1[%c2, %c0_13, %c0_14] : memref<5x16x16xf32, #tpu.memory_space<vmem>>, vector<1x16x16xf32>
    %11 = vector.shape_cast %10 : vector<1x16x16xf32> to vector<16x16xf32>
    %cst_15 = arith.constant dense<0.000000e+00> : vector<16x4xf32>
    %12 = tpu.matmul %11, %0, %cst_15 {dimension_numbers = #tpu.dot_dimension_numbers<[1], [0], [0], [1], [0, 0, 1, 1], [], []>} : vector<16x16xf32>, vector<16x4xf32>, vector<16x4xf32> -> vector<16x4xf32>
    %c3 = arith.constant 3 : index
    %c0_16 = arith.constant 0 : index
    %c0_17 = arith.constant 0 : index
    %13 = vector.load %arg1[%c3, %c0_16, %c0_17] : memref<5x16x16xf32, #tpu.memory_space<vmem>>, vector<1x16x16xf32>
    %14 = vector.shape_cast %13 : vector<1x16x16xf32> to vector<16x16xf32>
    %cst_18 = arith.constant dense<0.000000e+00> : vector<16x4xf32>
    %15 = tpu.matmul %14, %0, %cst_18 {dimension_numbers = #tpu.dot_dimension_numbers<[1], [0], [0], [1], [0, 0, 1, 1], [], []>} : vector<16x16xf32>, vector<16x4xf32>, vector<16x4xf32> -> vector<16x4xf32>
    %c4 = arith.constant 4 : index
    %c0_19 = arith.constant 0 : index
    %c0_20 = arith.constant 0 : index
    %16 = vector.load %arg1[%c4, %c0_19, %c0_20] : memref<5x16x16xf32, #tpu.memory_space<vmem>>, vector<1x16x16xf32>
    %17 = vector.shape_cast %16 : vector<1x16x16xf32> to vector<16x16xf32>
    %cst_21 = arith.constant dense<0.000000e+00> : vector<16x4xf32>
    %18 = tpu.matmul %17, %0, %cst_21 {dimension_numbers = #tpu.dot_dimension_numbers<[1], [0], [0], [1], [0, 0, 1, 1], [], []>} : vector<16x16xf32>, vector<16x4xf32>, vector<16x4xf32> -> vector<16x4xf32>
    %19 = tpu.concatenate %6, %9, %12, %15, %18 in 1 : vector<16x4xf32>, vector<16x4xf32>, vector<16x4xf32>, vector<16x4xf32>, vector<16x4xf32> -> vector<16x20xf32>
    %cst_22 = arith.constant dense<0.000000e+00> : vector<16x32xf32>
    %20 = tpu.matmul %19, %1, %cst_22 {dimension_numbers = #tpu.dot_dimension_numbers<[1], [0], [0], [1], [0, 0, 1, 1], [], []>} : vector<16x20xf32>, vector<20x32xf32>, vector<16x32xf32> -> vector<16x32xf32>
    %cst_23 = arith.constant dense<0.000000e+00> : vector<16x32xf32>
    %21 = tpu.matmul %0, %2, %cst_23 {dimension_numbers = #tpu.dot_dimension_numbers<[1], [0], [0], [1], [0, 0, 1, 1], [], []>} : vector<16x4xf32>, vector<4x32xf32>, vector<16x32xf32> -> vector<16x32xf32>
    %22 = vector.broadcast %3 : vector<1x32xf32> to vector<16x32xf32>
    %23 = arith.addf %21, %22 : vector<16x32xf32>
    %24 = arith.addf %23, %20 : vector<16x32xf32>
    %25 = math.tanh %24 : vector<16x32xf32>
    %c0_24 = arith.constant 0 : index
    %c0_25 = arith.constant 0 : index
    %c0_26 = arith.constant 0 : index
    %26 = vector.load %arg7[%c0_24, %c0_25, %c0_26] : memref<3x160x32xf32, #tpu.memory_space<vmem>>, vector<1x160x32xf32>
    %27 = vector.shape_cast %26 : vector<1x160x32xf32> to vector<160x32xf32>
    %c0_27 = arith.constant 0 : index
    %c0_28 = arith.constant 0 : index
    %c0_29 = arith.constant 0 : index
    %28 = vector.load %arg8[%c0_27, %c0_28, %c0_29] : memref<3x32x32xf32, #tpu.memory_space<vmem>>, vector<1x32x32xf32>
    %29 = vector.shape_cast %28 : vector<1x32x32xf32> to vector<32x32xf32>
    %c0_30 = arith.constant 0 : index
    %c0_31 = arith.constant 0 : index
    %c0_32 = arith.constant 0 : index
    %30 = vector.load %arg9[%c0_30, %c0_31, %c0_32] : memref<3x1x32xf32, #tpu.memory_space<vmem>>, vector<1x1x32xf32>
    %31 = vector.shape_cast %30 : vector<1x1x32xf32> to vector<1x32xf32>
    %c0_33 = arith.constant 0 : index
    %c0_34 = arith.constant 0 : index
    %c0_35 = arith.constant 0 : index
    %32 = vector.load %arg1[%c0_33, %c0_34, %c0_35] : memref<5x16x16xf32, #tpu.memory_space<vmem>>, vector<1x16x16xf32>
    %33 = vector.shape_cast %32 : vector<1x16x16xf32> to vector<16x16xf32>
    %cst_36 = arith.constant dense<0.000000e+00> : vector<16x32xf32>
    %34 = tpu.matmul %33, %25, %cst_36 {dimension_numbers = #tpu.dot_dimension_numbers<[1], [0], [0], [1], [0, 0, 1, 1], [], []>} : vector<16x16xf32>, vector<16x32xf32>, vector<16x32xf32> -> vector<16x32xf32>
    %c1_37 = arith.constant 1 : index
    %c0_38 = arith.constant 0 : index
    %c0_39 = arith.constant 0 : index
    %35 = vector.load %arg1[%c1_37, %c0_38, %c0_39] : memref<5x16x16xf32, #tpu.memory_space<vmem>>, vector<1x16x16xf32>
    %36 = vector.shape_cast %35 : vector<1x16x16xf32> to vector<16x16xf32>
    %cst_40 = arith.constant dense<0.000000e+00> : vector<16x32xf32>
    %37 = tpu.matmul %36, %25, %cst_40 {dimension_numbers = #tpu.dot_dimension_numbers<[1], [0], [0], [1], [0, 0, 1, 1], [], []>} : vector<16x16xf32>, vector<16x32xf32>, vector<16x32xf32> -> vector<16x32xf32>
    %c2_41 = arith.constant 2 : index
    %c0_42 = arith.constant 0 : index
    %c0_43 = arith.constant 0 : index
    %38 = vector.load %arg1[%c2_41, %c0_42, %c0_43] : memref<5x16x16xf32, #tpu.memory_space<vmem>>, vector<1x16x16xf32>
    %39 = vector.shape_cast %38 : vector<1x16x16xf32> to vector<16x16xf32>
    %cst_44 = arith.constant dense<0.000000e+00> : vector<16x32xf32>
    %40 = tpu.matmul %39, %25, %cst_44 {dimension_numbers = #tpu.dot_dimension_numbers<[1], [0], [0], [1], [0, 0, 1, 1], [], []>} : vector<16x16xf32>, vector<16x32xf32>, vector<16x32xf32> -> vector<16x32xf32>
    %c3_45 = arith.constant 3 : index
    %c0_46 = arith.constant 0 : index
    %c0_47 = arith.constant 0 : index
    %41 = vector.load %arg1[%c3_45, %c0_46, %c0_47] : memref<5x16x16xf32, #tpu.memory_space<vmem>>, vector<1x16x16xf32>
    %42 = vector.shape_cast %41 : vector<1x16x16xf32> to vector<16x16xf32>
    %cst_48 = arith.constant dense<0.000000e+00> : vector<16x32xf32>
    %43 = tpu.matmul %42, %25, %cst_48 {dimension_numbers = #tpu.dot_dimension_numbers<[1], [0], [0], [1], [0, 0, 1, 1], [], []>} : vector<16x16xf32>, vector<16x32xf32>, vector<16x32xf32> -> vector<16x32xf32>
    %c4_49 = arith.constant 4 : index
    %c0_50 = arith.constant 0 : index
    %c0_51 = arith.constant 0 : index
    %44 = vector.load %arg1[%c4_49, %c0_50, %c0_51] : memref<5x16x16xf32, #tpu.memory_space<vmem>>, vector<1x16x16xf32>
    %45 = vector.shape_cast %44 : vector<1x16x16xf32> to vector<16x16xf32>
    %cst_52 = arith.constant dense<0.000000e+00> : vector<16x32xf32>
    %46 = tpu.matmul %45, %25, %cst_52 {dimension_numbers = #tpu.dot_dimension_numbers<[1], [0], [0], [1], [0, 0, 1, 1], [], []>} : vector<16x16xf32>, vector<16x32xf32>, vector<16x32xf32> -> vector<16x32xf32>
    %47 = tpu.concatenate %34, %37, %40, %43, %46 in 1 : vector<16x32xf32>, vector<16x32xf32>, vector<16x32xf32>, vector<16x32xf32>, vector<16x32xf32> -> vector<16x160xf32>
    %cst_53 = arith.constant dense<0.000000e+00> : vector<16x32xf32>
    %48 = tpu.matmul %47, %27, %cst_53 {dimension_numbers = #tpu.dot_dimension_numbers<[1], [0], [0], [1], [0, 0, 1, 1], [], []>} : vector<16x160xf32>, vector<160x32xf32>, vector<16x32xf32> -> vector<16x32xf32>
    %cst_54 = arith.constant dense<0.000000e+00> : vector<16x32xf32>
    %49 = tpu.matmul %25, %29, %cst_54 {dimension_numbers = #tpu.dot_dimension_numbers<[1], [0], [0], [1], [0, 0, 1, 1], [], []>} : vector<16x32xf32>, vector<32x32xf32>, vector<16x32xf32> -> vector<16x32xf32>
    %50 = vector.broadcast %31 : vector<1x32xf32> to vector<16x32xf32>
    %51 = arith.addf %49, %50 : vector<16x32xf32>
    %52 = arith.addf %51, %48 : vector<16x32xf32>
    %53 = math.tanh %52 : vector<16x32xf32>
    %c1_55 = arith.constant 1 : index
    %c0_56 = arith.constant 0 : index
    %c0_57 = arith.constant 0 : index
    %54 = vector.load %arg7[%c1_55, %c0_56, %c0_57] : memref<3x160x32xf32, #tpu.memory_space<vmem>>, vector<1x160x32xf32>
    %55 = vector.shape_cast %54 : vector<1x160x32xf32> to vector<160x32xf32>
    %c1_58 = arith.constant 1 : index
    %c0_59 = arith.constant 0 : index
    %c0_60 = arith.constant 0 : index
    %56 = vector.load %arg8[%c1_58, %c0_59, %c0_60] : memref<3x32x32xf32, #tpu.memory_space<vmem>>, vector<1x32x32xf32>
    %57 = vector.shape_cast %56 : vector<1x32x32xf32> to vector<32x32xf32>
    %c1_61 = arith.constant 1 : index
    %c0_62 = arith.constant 0 : index
    %c0_63 = arith.constant 0 : index
    %58 = vector.load %arg9[%c1_61, %c0_62, %c0_63] : memref<3x1x32xf32, #tpu.memory_space<vmem>>, vector<1x1x32xf32>
    %59 = vector.shape_cast %58 : vector<1x1x32xf32> to vector<1x32xf32>
    %c0_64 = arith.constant 0 : index
    %c0_65 = arith.constant 0 : index
    %c0_66 = arith.constant 0 : index
    %60 = vector.load %arg1[%c0_64, %c0_65, %c0_66] : memref<5x16x16xf32, #tpu.memory_space<vmem>>, vector<1x16x16xf32>
    %61 = vector.shape_cast %60 : vector<1x16x16xf32> to vector<16x16xf32>
    %cst_67 = arith.constant dense<0.000000e+00> : vector<16x32xf32>
    %62 = tpu.matmul %61, %53, %cst_67 {dimension_numbers = #tpu.dot_dimension_numbers<[1], [0], [0], [1], [0, 0, 1, 1], [], []>} : vector<16x16xf32>, vector<16x32xf32>, vector<16x32xf32> -> vector<16x32xf32>
    %c1_68 = arith.constant 1 : index
    %c0_69 = arith.constant 0 : index
    %c0_70 = arith.constant 0 : index
    %63 = vector.load %arg1[%c1_68, %c0_69, %c0_70] : memref<5x16x16xf32, #tpu.memory_space<vmem>>, vector<1x16x16xf32>
    %64 = vector.shape_cast %63 : vector<1x16x16xf32> to vector<16x16xf32>
    %cst_71 = arith.constant dense<0.000000e+00> : vector<16x32xf32>
    %65 = tpu.matmul %64, %53, %cst_71 {dimension_numbers = #tpu.dot_dimension_numbers<[1], [0], [0], [1], [0, 0, 1, 1], [], []>} : vector<16x16xf32>, vector<16x32xf32>, vector<16x32xf32> -> vector<16x32xf32>
    %c2_72 = arith.constant 2 : index
    %c0_73 = arith.constant 0 : index
    %c0_74 = arith.constant 0 : index
    %66 = vector.load %arg1[%c2_72, %c0_73, %c0_74] : memref<5x16x16xf32, #tpu.memory_space<vmem>>, vector<1x16x16xf32>
    %67 = vector.shape_cast %66 : vector<1x16x16xf32> to vector<16x16xf32>
    %cst_75 = arith.constant dense<0.000000e+00> : vector<16x32xf32>
    %68 = tpu.matmul %67, %53, %cst_75 {dimension_numbers = #tpu.dot_dimension_numbers<[1], [0], [0], [1], [0, 0, 1, 1], [], []>} : vector<16x16xf32>, vector<16x32xf32>, vector<16x32xf32> -> vector<16x32xf32>
    %c3_76 = arith.constant 3 : index
    %c0_77 = arith.constant 0 : index
    %c0_78 = arith.constant 0 : index
    %69 = vector.load %arg1[%c3_76, %c0_77, %c0_78] : memref<5x16x16xf32, #tpu.memory_space<vmem>>, vector<1x16x16xf32>
    %70 = vector.shape_cast %69 : vector<1x16x16xf32> to vector<16x16xf32>
    %cst_79 = arith.constant dense<0.000000e+00> : vector<16x32xf32>
    %71 = tpu.matmul %70, %53, %cst_79 {dimension_numbers = #tpu.dot_dimension_numbers<[1], [0], [0], [1], [0, 0, 1, 1], [], []>} : vector<16x16xf32>, vector<16x32xf32>, vector<16x32xf32> -> vector<16x32xf32>
    %c4_80 = arith.constant 4 : index
    %c0_81 = arith.constant 0 : index
    %c0_82 = arith.constant 0 : index
    %72 = vector.load %arg1[%c4_80, %c0_81, %c0_82] : memref<5x16x16xf32, #tpu.memory_space<vmem>>, vector<1x16x16xf32>
    %73 = vector.shape_cast %72 : vector<1x16x16xf32> to vector<16x16xf32>
    %cst_83 = arith.constant dense<0.000000e+00> : vector<16x32xf32>
    %74 = tpu.matmul %73, %53, %cst_83 {dimension_numbers = #tpu.dot_dimension_numbers<[1], [0], [0], [1], [0, 0, 1, 1], [], []>} : vector<16x16xf32>, vector<16x32xf32>, vector<16x32xf32> -> vector<16x32xf32>
    %75 = tpu.concatenate %62, %65, %68, %71, %74 in 1 : vector<16x32xf32>, vector<16x32xf32>, vector<16x32xf32>, vector<16x32xf32>, vector<16x32xf32> -> vector<16x160xf32>
    %cst_84 = arith.constant dense<0.000000e+00> : vector<16x32xf32>
    %76 = tpu.matmul %75, %55, %cst_84 {dimension_numbers = #tpu.dot_dimension_numbers<[1], [0], [0], [1], [0, 0, 1, 1], [], []>} : vector<16x160xf32>, vector<160x32xf32>, vector<16x32xf32> -> vector<16x32xf32>
    %cst_85 = arith.constant dense<0.000000e+00> : vector<16x32xf32>
    %77 = tpu.matmul %53, %57, %cst_85 {dimension_numbers = #tpu.dot_dimension_numbers<[1], [0], [0], [1], [0, 0, 1, 1], [], []>} : vector<16x32xf32>, vector<32x32xf32>, vector<16x32xf32> -> vector<16x32xf32>
    %78 = vector.broadcast %59 : vector<1x32xf32> to vector<16x32xf32>
    %79 = arith.addf %77, %78 : vector<16x32xf32>
    %80 = arith.addf %79, %76 : vector<16x32xf32>
    %81 = math.tanh %80 : vector<16x32xf32>
    %c2_86 = arith.constant 2 : index
    %c0_87 = arith.constant 0 : index
    %c0_88 = arith.constant 0 : index
    %82 = vector.load %arg7[%c2_86, %c0_87, %c0_88] : memref<3x160x32xf32, #tpu.memory_space<vmem>>, vector<1x160x32xf32>
    %83 = vector.shape_cast %82 : vector<1x160x32xf32> to vector<160x32xf32>
    %c2_89 = arith.constant 2 : index
    %c0_90 = arith.constant 0 : index
    %c0_91 = arith.constant 0 : index
    %84 = vector.load %arg8[%c2_89, %c0_90, %c0_91] : memref<3x32x32xf32, #tpu.memory_space<vmem>>, vector<1x32x32xf32>
    %85 = vector.shape_cast %84 : vector<1x32x32xf32> to vector<32x32xf32>
    %c2_92 = arith.constant 2 : index
    %c0_93 = arith.constant 0 : index
    %c0_94 = arith.constant 0 : index
    %86 = vector.load %arg9[%c2_92, %c0_93, %c0_94] : memref<3x1x32xf32, #tpu.memory_space<vmem>>, vector<1x1x32xf32>
    %87 = vector.shape_cast %86 : vector<1x1x32xf32> to vector<1x32xf32>
    %c0_95 = arith.constant 0 : index
    %c0_96 = arith.constant 0 : index
    %c0_97 = arith.constant 0 : index
    %88 = vector.load %arg1[%c0_95, %c0_96, %c0_97] : memref<5x16x16xf32, #tpu.memory_space<vmem>>, vector<1x16x16xf32>
    %89 = vector.shape_cast %88 : vector<1x16x16xf32> to vector<16x16xf32>
    %cst_98 = arith.constant dense<0.000000e+00> : vector<16x32xf32>
    %90 = tpu.matmul %89, %81, %cst_98 {dimension_numbers = #tpu.dot_dimension_numbers<[1], [0], [0], [1], [0, 0, 1, 1], [], []>} : vector<16x16xf32>, vector<16x32xf32>, vector<16x32xf32> -> vector<16x32xf32>
    %c1_99 = arith.constant 1 : index
    %c0_100 = arith.constant 0 : index
    %c0_101 = arith.constant 0 : index
    %91 = vector.load %arg1[%c1_99, %c0_100, %c0_101] : memref<5x16x16xf32, #tpu.memory_space<vmem>>, vector<1x16x16xf32>
    %92 = vector.shape_cast %91 : vector<1x16x16xf32> to vector<16x16xf32>
    %cst_102 = arith.constant dense<0.000000e+00> : vector<16x32xf32>
    %93 = tpu.matmul %92, %81, %cst_102 {dimension_numbers = #tpu.dot_dimension_numbers<[1], [0], [0], [1], [0, 0, 1, 1], [], []>} : vector<16x16xf32>, vector<16x32xf32>, vector<16x32xf32> -> vector<16x32xf32>
    %c2_103 = arith.constant 2 : index
    %c0_104 = arith.constant 0 : index
    %c0_105 = arith.constant 0 : index
    %94 = vector.load %arg1[%c2_103, %c0_104, %c0_105] : memref<5x16x16xf32, #tpu.memory_space<vmem>>, vector<1x16x16xf32>
    %95 = vector.shape_cast %94 : vector<1x16x16xf32> to vector<16x16xf32>
    %cst_106 = arith.constant dense<0.000000e+00> : vector<16x32xf32>
    %96 = tpu.matmul %95, %81, %cst_106 {dimension_numbers = #tpu.dot_dimension_numbers<[1], [0], [0], [1], [0, 0, 1, 1], [], []>} : vector<16x16xf32>, vector<16x32xf32>, vector<16x32xf32> -> vector<16x32xf32>
    %c3_107 = arith.constant 3 : index
    %c0_108 = arith.constant 0 : index
    %c0_109 = arith.constant 0 : index
    %97 = vector.load %arg1[%c3_107, %c0_108, %c0_109] : memref<5x16x16xf32, #tpu.memory_space<vmem>>, vector<1x16x16xf32>
    %98 = vector.shape_cast %97 : vector<1x16x16xf32> to vector<16x16xf32>
    %cst_110 = arith.constant dense<0.000000e+00> : vector<16x32xf32>
    %99 = tpu.matmul %98, %81, %cst_110 {dimension_numbers = #tpu.dot_dimension_numbers<[1], [0], [0], [1], [0, 0, 1, 1], [], []>} : vector<16x16xf32>, vector<16x32xf32>, vector<16x32xf32> -> vector<16x32xf32>
    %c4_111 = arith.constant 4 : index
    %c0_112 = arith.constant 0 : index
    %c0_113 = arith.constant 0 : index
    %100 = vector.load %arg1[%c4_111, %c0_112, %c0_113] : memref<5x16x16xf32, #tpu.memory_space<vmem>>, vector<1x16x16xf32>
    %101 = vector.shape_cast %100 : vector<1x16x16xf32> to vector<16x16xf32>
    %cst_114 = arith.constant dense<0.000000e+00> : vector<16x32xf32>
    %102 = tpu.matmul %101, %81, %cst_114 {dimension_numbers = #tpu.dot_dimension_numbers<[1], [0], [0], [1], [0, 0, 1, 1], [], []>} : vector<16x16xf32>, vector<16x32xf32>, vector<16x32xf32> -> vector<16x32xf32>
    %103 = tpu.concatenate %90, %93, %96, %99, %102 in 1 : vector<16x32xf32>, vector<16x32xf32>, vector<16x32xf32>, vector<16x32xf32>, vector<16x32xf32> -> vector<16x160xf32>
    %cst_115 = arith.constant dense<0.000000e+00> : vector<16x32xf32>
    %104 = tpu.matmul %103, %83, %cst_115 {dimension_numbers = #tpu.dot_dimension_numbers<[1], [0], [0], [1], [0, 0, 1, 1], [], []>} : vector<16x160xf32>, vector<160x32xf32>, vector<16x32xf32> -> vector<16x32xf32>
    %cst_116 = arith.constant dense<0.000000e+00> : vector<16x32xf32>
    %105 = tpu.matmul %81, %85, %cst_116 {dimension_numbers = #tpu.dot_dimension_numbers<[1], [0], [0], [1], [0, 0, 1, 1], [], []>} : vector<16x32xf32>, vector<32x32xf32>, vector<16x32xf32> -> vector<16x32xf32>
    %106 = vector.broadcast %87 : vector<1x32xf32> to vector<16x32xf32>
    %107 = arith.addf %105, %106 : vector<16x32xf32>
    %108 = arith.addf %107, %104 : vector<16x32xf32>
    %109 = math.tanh %108 : vector<16x32xf32>
    %110 = tpu.concatenate %25, %53, %81, %109 in 1 : vector<16x32xf32>, vector<16x32xf32>, vector<16x32xf32>, vector<16x32xf32> -> vector<16x128xf32>
    %c0_117 = arith.constant 0 : index
    %c0_118 = arith.constant 0 : index
    %111 = vector.load %arg2[%c0_117, %c0_118] : memref<2x16xf32, #tpu.memory_space<vmem>>, vector<2x16xf32>
    %cst_119 = arith.constant dense<0.000000e+00> : vector<2x128xf32>
    %112 = tpu.matmul %111, %110, %cst_119 {dimension_numbers = #tpu.dot_dimension_numbers<[1], [0], [0], [1], [0, 0, 1, 1], [], []>} : vector<2x16xf32>, vector<16x128xf32>, vector<2x128xf32> -> vector<2x128xf32>
    %c0_120 = arith.constant 0 : index
    %c0_121 = arith.constant 0 : index
    %113 = vector.load %arg3[%c0_120, %c0_121] : memref<2x16xf32, #tpu.memory_space<vmem>>, vector<2x16xf32>
    %cst_122 = arith.constant dense<0.000000e+00> : vector<2x128xf32>
    %114 = tpu.matmul %113, %110, %cst_122 {dimension_numbers = #tpu.dot_dimension_numbers<[1], [0], [0], [1], [0, 0, 1, 1], [], []>} : vector<2x16xf32>, vector<16x128xf32>, vector<2x128xf32> -> vector<2x128xf32>
    %115 = tpu.concatenate %112, %114 in 1 : vector<2x128xf32>, vector<2x128xf32> -> vector<2x256xf32>
    %c0_123 = arith.constant 0 : index
    %c0_124 = arith.constant 0 : index
    %116 = vector.load %arg10[%c0_123, %c0_124] : memref<256x128xf32, #tpu.memory_space<vmem>>, vector<256x128xf32>
    %cst_125 = arith.constant dense<0.000000e+00> : vector<2x128xf32>
    %117 = tpu.matmul %115, %116, %cst_125 {dimension_numbers = #tpu.dot_dimension_numbers<[1], [0], [0], [1], [0, 0, 1, 1], [], []>} : vector<2x256xf32>, vector<256x128xf32>, vector<2x128xf32> -> vector<2x128xf32>
    %c0_126 = arith.constant 0 : index
    %c0_127 = arith.constant 0 : index
    %118 = vector.load %arg11[%c0_126, %c0_127] : memref<1x128xf32, #tpu.memory_space<vmem>>, vector<1x128xf32>
    %119 = vector.broadcast %118 : vector<1x128xf32> to vector<2x128xf32>
    %120 = arith.addf %117, %119 : vector<2x128xf32>
    %cst_128 = arith.constant 0.000000e+00 : f32
    %121 = vector.broadcast %cst_128 : f32 to vector<2x128xf32>
    %122 = arith.maximumf %120, %121 : vector<2x128xf32>
    %c0_129 = arith.constant 0 : index
    %c0_130 = arith.constant 0 : index
    %123 = vector.load %arg12[%c0_129, %c0_130] : memref<128x5xf32, #tpu.memory_space<vmem>>, vector<128x5xf32>
    %cst_131 = arith.constant dense<0.000000e+00> : vector<2x5xf32>
    %124 = tpu.matmul %122, %123, %cst_131 {dimension_numbers = #tpu.dot_dimension_numbers<[1], [0], [0], [1], [0, 0, 1, 1], [], []>} : vector<2x128xf32>, vector<128x5xf32>, vector<2x5xf32> -> vector<2x5xf32>
    %c0_132 = arith.constant 0 : index
    %c0_133 = arith.constant 0 : index
    %125 = vector.load %arg13[%c0_132, %c0_133] : memref<1x5xf32, #tpu.memory_space<vmem>>, vector<1x5xf32>
    %126 = vector.broadcast %125 : vector<1x5xf32> to vector<2x5xf32>
    %127 = arith.addf %124, %126 : vector<2x5xf32>
    %cst_134 = arith.constant dense<0xFF800000> : vector<2xf32>
    %128 = vector.multi_reduction <maximumf>, %127, %cst_134 [1] : vector<2x5xf32> to vector<2xf32>
    %129 = vector.shape_cast %128 : vector<2xf32> to vector<2x1xf32>
    %130 = vector.broadcast %129 : vector<2x1xf32> to vector<2x5xf32>
    %131 = arith.subf %127, %130 : vector<2x5xf32>
    %132 = math.exp %131 : vector<2x5xf32>
    %cst_135 = arith.constant dense<0.000000e+00> : vector<2xf32>
    %133 = vector.multi_reduction <add>, %132, %cst_135 [1] : vector<2x5xf32> to vector<2xf32>
    %134 = vector.shape_cast %133 : vector<2xf32> to vector<2x1xf32>
    %135 = math.log %134 : vector<2x1xf32>
    %136 = vector.broadcast %135 : vector<2x1xf32> to vector<2x5xf32>
    %137 = arith.subf %131, %136 : vector<2x5xf32>
    %c0_136 = arith.constant 0 : index
    %c0_137 = arith.constant 0 : index
    %138 = vector.load %arg14[%c0_136, %c0_137] : memref<2x5xf32, #tpu.memory_space<vmem>>, vector<2x5xf32>
    tpu.vector_store %arg14[%c0_136, %c0_137], %137 {strides = array<i32>} : memref<2x5xf32, #tpu.memory_space<vmem>>, vector<2x5xf32>,
    return
  }
}

</mosaic_0001>

<bundles_post_ra>
// kernel: tpu_custom_call.1
= control target key start
LH: loop header
LB: loop body
LE: loop exit
PB: predicated region body
PF: predicated region fallthrough
CT: control target
= control target key end

     0   :  { %vm57_vm0 = vcmask 130048   ;;  %s4355_s0 = inlined_call_operand.vmem [shape: f32[16,4], index: 0, kind: input, shape index: {}]   ;;  %s4356_s1 = inlined_call_operand.vmem [shape: f32[5,16,16], index: 1, kind: input, shape index: {}]   ;;  %s4357_s2 = inlined_call_operand.vmem [shape: f32[2,16], index: 2, kind: input, shape index: {}]   ;;  %s4358_s3 = inlined_call_operand.vmem [shape: f32[2,16], index: 3, kind: input, shape index: {}]   ;;  %s4359_s4 = inlined_call_operand.vmem [shape: f32[20,32], index: 4, kind: input, shape index: {}]   ;;  %s4360_s5 = inlined_call_operand.vmem [shape: f32[4,32], index: 5, kind: input, shape index: {}]   ;;  %s4361_s6 = inlined_call_operand.vmem [shape: f32[1,32], index: 6, kind: input, shape index: {}]   ;;  %s4362_s7 = inlined_call_operand.vmem [shape: f32[3,160,32], index: 7, kind: input, shape index: {}]   ;;  %s4363_s8 = inlined_call_operand.vmem [shape: f32[3,32,32], index: 8, kind: input, shape index: {}]   ;;  %s4364_s9 = inlined_call_operand.vmem [shape: f32[3,1,32], index: 9, kind: input, shape index: {}]   ;;  %s4365_s10 = inlined_call_operand.vmem [shape: f32[256,128], index: 10, kind: input, shape index: {}]   ;;  %s4366_s11 = inlined_call_operand.vmem [shape: f32[1,128], index: 11, kind: input, shape index: {}]   ;;  %s4367_s12 = inlined_call_operand.vmem [shape: f32[128,5], index: 12, kind: input, shape index: {}]   ;;  %s4368_s13 = inlined_call_operand.vmem [shape: f32[1,5], index: 13, kind: input, shape index: {}]   ;;  %s4369_s14 = inlined_call_operand.hbm [shape: f32[2,5], index: 14, kind: output, shape index: {}]  }
   0x1   :  { %v49_v0 = vld [vmem:[%s4355_s0 + $0x8] sm:$0xff]  ;;  %v48_v1 = vld [vmem:[%s4355_s0] sm:$0xff]  ;;  %v3600_v4 = vld [vmem:[%s4356_s1 + $0x10] sm:$0xff] }
   0x2   :  { %v3588_v2 = vld [vmem:[%s4356_s1] sm:$0xff]  ;;  %3206 = vmatprep.subr.mxu1 %v49_v0  ;;  %v3595_v3 = vld [vmem:[%s4356_s1 + $0x8] sm:$0xff] }
   0x3   :  { %3210 = vmatprep.mubr.msk.f32.mxu1 %vm57_vm0, %v3588_v2  ;;  %3207 = vmatpush3.msra.mxu1 %v49_v0 }
   0x4   :  { %3208 = vmatprep.subr.mxu1 %v48_v1 }
   0x5   :  { %3209 = vmatpush3.msra.mxu1 %v48_v1 }
   0x6   :  { %19 = vsyncpa [#allocation3], 0  ;;  %3211 = vmatmul.mubr.msk.f32.vlgmr.msra.gmra.mxu1 %vm57_vm0, %v3595_v3  ;;  %3213 = vmatprep.subr.mxu1 %v49_v0  ;;  %v3609_v5 = vld [vmem:[%s4356_s1 + $0x18] sm:$0xff]  ;;  %v3614_v6 = vld [vmem:[%s4356_s1 + $0x20] sm:$0xff]  ;;  %vm507_vm1 = vcmask 31744   ;;  %vm525_vm2 = vcmask 1043456  }
   0x7   :  { %3214 = vmatpush3.msra.mxu1 %v49_v0  ;;  %3217 = vmatprep.mubr.msk.f32.mxu1 %vm57_vm0, %v3600_v4  ;;  %v3623_v7 = vld [vmem:[%s4356_s1 + $0x28] sm:$0xff]  ;;  %v3628_v8 = vld [vmem:[%s4356_s1 + $0x30] sm:$0xff]  ;;  %v3637_v9 = vld [vmem:[%s4356_s1 + $0x38] sm:$0xff]  ;;  %s3494_s24 = smov 4   ;;  %s3496_s27 = smov 12   ;;  %vm510_vm3 = vcmask 64512  }
   0x8   :  { %3215 = vmatprep.subr.mxu1 %v48_v1  ;;  %v3642_v10 = vld [vmem:[%s4356_s1 + $0x40] sm:$0xff]  ;;  %v3651_v11 = vld [vmem:[%s4356_s1 + $0x48] sm:$0xff]  ;;  %3252 = vmatprep.mubr.msk.f32.mxu0 %vm507_vm1, %v48_v1  ;;  %v52_v14 = vld [vmem:[%s4359_s4 + $0x10] sm:$0xf]  ;;  %s3497_s28 = smov 16   ;;  %vm513_vm4 = vcmask 97280  }
   0x9   :  { %3216 = vmatpush3.msra.mxu1 %v48_v1  ;;  %v53_v15 = vld [vmem:[%s4360_s5] sm:$0xf]  ;;  %v51_v17 = vld [vmem:[%s4359_s4 + $0x8] sm:$0xff]  ;;  %s3495_s5 = smov 8   ;;  %vm518_vm5 = vcmask 162816   ;;  %v721_v53 = vld [vmem:[%s4363_s8 + $0x18] sm:$0xff] }
   0xa   :  { %3218 = vmatmul.mubr.msk.f32.vlgmr.msra.gmra.mxu1 %vm57_vm0, %v3609_v5  ;;  %3220 = vmatprep.subr.mxu1 %v49_v0  ;;  %v50_v19 = vld [vmem:[%s4359_s4] sm:$0xff]  ;;  %vm1122_vm6 = vcmask 261120   ;;  %v720_v54 = vld [vmem:[%s4363_s8 + $0x10] sm:$0xff]  ;;  %v719_v55 = vld [vmem:[%s4363_s8 + $0x8] sm:$0xff]  ;;  %v3498_v58 = vmov 0.0   ;;  %s3499_s19 = smov 32  }
   0xb   :  { %3221 = vmatpush3.msra.mxu1 %v49_v0  ;;  %3224 = vmatprep.mubr.msk.f32.mxu1 %vm57_vm0, %v3614_v6  ;;  %v2939_v43 = vld [vmem:[%s4361_s6] ss:$0 sm:$0xff]  ;;  %v713_v57 = vld [vmem:[%s4362_s7 + $0x78] sm:$0xff]  ;;  %v712_v59 = vld [vmem:[%s4362_s7 + $0x70] sm:$0xff]  ;;  %s3500_s20 = smov 96   ;;  %s3501_s21 = smov 64  }
   0xc   :  { %3222 = vmatprep.subr.mxu1 %v48_v1  ;;  %3250 = vmatprep.subr.msk.mxu0 %vm525_vm2, %v53_v15  ;;  %v718_v56 = vld [vmem:[%s4363_s8] sm:$0xff]  ;;  %v711_v60 = vld [vmem:[%s4362_s7 + $0x68] sm:$0xff]  ;;  %v709_v62 = vld [vmem:[%s4362_s7 + $0x58] sm:$0xff]  ;;  %vm1125_vm7 = vcmask 523264   ;;  %vm1128_vm8 = vcmask 785408   ;;  %vm3502_vm9 = vmmov 0  }
   0xd   :  { %3223 = vmatpush3.msra.mxu1 %v48_v1  ;;  %3251 = vmatpush3.msk.msra.mxu0 %vm525_vm2, %v53_v15  ;;  %v710_v61 = vld [vmem:[%s4362_s7 + $0x60] sm:$0xff]  ;;  %v708_v63 = vld [vmem:[%s4362_s7 + $0x50] sm:$0xff]  ;;  %vm2890_vm10 = vcmask 33792  }
   0xe   :  { %3225 = vmatmul.mubr.msk.f32.vlgmr.msra.gmra.mxu1 %vm57_vm0, %v3623_v7  ;;  %3227 = vmatprep.subr.mxu1 %v49_v0  ;;  %v702_v15 = vld [vmem:[%s4362_s7 + $0x20] sm:$0xff] }
   0xf   :  { %3228 = vmatpush3.msra.mxu1 %v49_v0  ;;  %3231 = vmatprep.mubr.msk.f32.mxu1 %vm57_vm0, %v3628_v8 }
  0x10   :  { %3229 = vmatprep.subr.mxu1 %v48_v1  ;;  %3253 = vmatmul.mubr.msk.f32.vlgmr.msra.gmra.mxu0 %vm507_vm1, %v49_v0 }
  0x11   :  { %3230 = vmatpush3.msra.mxu1 %v48_v1  ;;  %3266 = vmatprep.mubr.msk.f32.mxu0 %vm57_vm0, %v3600_v4 }
  0x12   :  { %3232 = vmatmul.mubr.msk.f32.vlgmr.msra.gmra.mxu1 %vm57_vm0, %v3637_v9  ;;  %3234 = vmatprep.subr.mxu1 %v49_v0 }
  0x13   :  { %3235 = vmatpush3.msra.mxu1 %v49_v0  ;;  %3238 = vmatprep.mubr.msk.f32.mxu1 %vm57_vm0, %v3642_v10  ;;  %v707_v0 = vld [vmem:[%s4362_s7 + $0x48] sm:$0xff] }
  0x14   :  { %3236 = vmatprep.subr.mxu1 %v48_v1 }
  0x15   :  { %3237 = vmatpush3.msra.mxu1 %v48_v1  ;;  %v706_v1 = vld [vmem:[%s4362_s7 + $0x40] sm:$0xff] }
  0x16   :  { %3239 = vmatmul.mubr.msk.f32.vlgmr.msra.gmra.mxu1 %vm57_vm0, %v3651_v11  ;;  %3241 = vmatprep.subr.msk.mxu1 %vm525_vm2, %v52_v14 }
  0x17   :  { %3242 = vmatpush3.msk.msra.mxu1 %vm525_vm2, %v52_v14  ;;  %v703_v14 = vld [vmem:[%s4362_s7 + $0x28] sm:$0xff] }
  0x18   :  { %3243 = vmatprep.subr.mxu1 %v51_v17 }
  0x19   :  { %3244 = vmatpush3.msra.mxu1 %v51_v17  ;;  %v700_v17 = vld [vmem:[%s4362_s7 + $0x10] sm:$0xff] }
  0x1a   :  { %3245 = vmatprep.subr.mxu1 %v50_v19 }
  0x1b   :  { %3246 = vmatpush3.msra.mxu1 %v50_v19  ;;  %v698_v19 = vld [vmem:[%s4362_s7] sm:$0xff] }
  0xc6   :  { %v3212_v12 = vpop.f32.mrf.mxu1 }
  0xc8   :  { %v130_v13 = vpop.f32.mrf.mxu1 }
  0xca   :  { %v3219_v16 = vpop.f32.mrf.mxu1 }
  0xcb   :  { %479 = vrot.lane.b32.xlu0 %v3219_v16, %s3494_s24  ;;  %v701_v16 = vld [vmem:[%s4362_s7 + $0x18] sm:$0xff] }
  0xcc   :  { %v214_v18 = vpop.f32.mrf.mxu1 }
  0xce   :  { %v3226_v20 = vpop.f32.mrf.mxu1 }
  0xcf   :  { %477 = vrot.lane.b32.xlu0 %v214_v18, %s3494_s24  ;;  %487 = vrot.lane.b32.xlu1 %v3226_v20, %s3495_s5  ;;  %v699_v18 = vld [vmem:[%s4362_s7 + $0x8] sm:$0xff]  ;;  %v717_v20 = vld [vmem:[%s4362_s7 + $0x98] sm:$0xff] }
  0xd0   :  { %v298_v21 = vpop.f32.mrf.mxu1  ;;  %v3254_v42 = vpop.f32.mrf.mxu0 }
  0xd1   :  { %v691_v44 = vadd.f32 %v3254_v42, %v2939_v43 }
  0xd2   :  { %v3233_v22 = vpop.f32.mrf.mxu1  ;;  %v685_v45 = vpop.f32.mrf.mxu0 }
  0xd3   :  { %485 = vrot.lane.b32.xlu1 %v298_v21, %s3495_s5  ;;  %v686_v47 = vadd.f32 %v2939_v43, %v685_v45  ;;  %v716_v21 = vld [vmem:[%s4362_s7 + $0x90] sm:$0xff] }
  0xd4   :  { %v382_v23 = vpop.f32.mrf.mxu1 }
  0xd5   :  { %493 = vrot.lane.b32.xlu0 %v382_v23, %s3496_s27  ;;  %v714_v23 = vld [vmem:[%s4362_s7 + $0x80] sm:$0xff] }
  0xd6   :  { %v3240_v24 = vpop.f32.mrf.mxu1 }
  0xd7   :  { %495 = vrot.lane.b32.xlu1 %v3233_v22, %s3496_s27  ;;  %v715_v22 = vld [vmem:[%s4362_s7 + $0x88] sm:$0xff] }
  0xd8   :  { %v466_v25 = vpop.f32.mrf.mxu1 }
  0xd9   :  { %501 = vrot.lane.b32.xlu0 %v466_v25, %s3497_s28 }
  0xdb   :  { %503 = vrot.lane.b32.xlu1 %v3240_v24, %s3497_s28 }
 0x13d   :  { %v480_v26 = vpop.permute.xlu0 %479 }
 0x13e   :  { %v509_v34 = vsel %vm507_vm1, %v3212_v12, %v480_v26  ;;  %v705_v12 = vld [vmem:[%s4362_s7 + $0x38] sm:$0xff] }
 0x141   :  { %v488_v27 = vpop.permute.xlu1 %487  ;;  %v478_v28 = vpop.permute.xlu0 %477 }
 0x142   :  { %v508_v30 = vsel %vm507_vm1, %v130_v13, %v478_v28  ;;  %v512_v37 = vsel %vm510_vm3, %v509_v34, %v488_v27  ;;  %v704_v13 = vld [vmem:[%s4362_s7 + $0x30] sm:$0xff] }
 0x145   :  { %v486_v29 = vpop.permute.xlu1 %485 }
 0x146   :  { %v511_v32 = vsel %vm510_vm3, %v508_v30, %v486_v29 }
 0x147   :  { %v494_v31 = vpop.permute.xlu0 %493 }
 0x148   :  { %v514_v35 = vsel %vm513_vm4, %v511_v32, %v494_v31 }
 0x149   :  { %v496_v33 = vpop.permute.xlu1 %495 }
 0x14a   :  { %v515_v39 = vsel %vm513_vm4, %v512_v37, %v496_v33 }
 0x14b   :  { %v502_v36 = vpop.permute.xlu0 %501 }
 0x14c   :  { %v516_v38 = vsel %vm57_vm0, %v514_v35, %v502_v36 }
 0x14d   :  { %v504_v40 = vpop.permute.xlu1 %503  ;;  %3247 = vmatprep.mubr.msk.f32.mxu1 %vm518_vm5, %v516_v38 }
 0x14e   :  { %v517_v41 = vsel %vm57_vm0, %v515_v39, %v504_v40 }
 0x14f   :  { %3248 = vmatmul.mubr.msk.f32.vlgmr.msra.gmra.mxu1 %vm518_vm5, %v517_v41 }
 0x150   :  { %3259 = vmatprep.mubr.msk.f32.mxu1 %vm57_vm0, %v3588_v2 }
 0x20f   :  { %v3249_v46 = vpop.f32.mrf.mxu1 }
 0x210   :  { %v695_v48 = vadd.f32 %v3249_v46, %v691_v44  ;;  %v2981_v46 = vld [vmem:[%s4363_s8 + $0x38] sm:$0xff] }
 0x211   :  { %v595_v49 = vpop.f32.mrf.mxu1 }
 0x212   :  { %3452 = vtanh.f32 %v695_v48  ;;  %v694_v50 = vadd.f32 %v686_v47, %v595_v49  ;;  %v2980_v47 = vld [vmem:[%s4363_s8 + $0x30] sm:$0xff]  ;;  %v2979_v48 = vld [vmem:[%s4363_s8 + $0x28] sm:$0xff]  ;;  %v2978_v49 = vld [vmem:[%s4363_s8 + $0x20] sm:$0xff] }
 0x214   :  { %3454 = vtanh.f32 %v694_v50 }
 0x21f   :  { %v3680_v51 = vpop.eup %3452 }
 0x220   :  { %3255 = vmatprep.subr.mxu1 %v3680_v51  ;;  %3262 = vmatprep.subr.mxu0 %v3680_v51 }
 0x221   :  { %v3684_v52 = vpop.eup %3454  ;;  %3256 = vmatpush3.msra.mxu1 %v3680_v51  ;;  %3263 = vmatpush3.msra.mxu0 %v3680_v51 }
 0x222   :  { %3257 = vmatprep.subr.mxu1 %v3684_v52  ;;  %3264 = vmatprep.subr.mxu0 %v3684_v52 }
 0x223   :  { %3258 = vmatpush3.msra.mxu1 %v3684_v52  ;;  %3265 = vmatpush3.msra.mxu0 %v3684_v52 }
 0x224   :  { %3260 = vmatmul.mubr.msk.f32.vlgmr.msra.gmra.mxu1 %vm57_vm0, %v3595_v3  ;;  %3267 = vmatmul.mubr.msk.f32.vlgmr.msra.gmra.mxu0 %vm57_vm0, %v3609_v5 }
 0x225   :  { %3269 = vmatprep.subr.mxu1 %v3680_v51  ;;  %3276 = vmatprep.subr.mxu0 %v3680_v51 }
 0x226   :  { %3270 = vmatpush3.msra.mxu1 %v3680_v51  ;;  %3277 = vmatpush3.msra.mxu0 %v3680_v51 }
 0x227   :  { %3271 = vmatprep.subr.mxu1 %v3684_v52  ;;  %3278 = vmatprep.subr.mxu0 %v3684_v52 }
 0x228   :  { %3272 = vmatpush3.msra.mxu1 %v3684_v52  ;;  %3273 = vmatprep.mubr.msk.f32.mxu1 %vm57_vm0, %v3614_v6 }
 0x229   :  { %3279 = vmatpush3.msra.mxu0 %v3684_v52  ;;  %3280 = vmatprep.mubr.msk.f32.mxu0 %vm57_vm0, %v3628_v8 }
 0x22a   :  { %3274 = vmatmul.mubr.msk.f32.vlgmr.msra.gmra.mxu1 %vm57_vm0, %v3623_v7  ;;  %3281 = vmatmul.mubr.msk.f32.vlgmr.msra.gmra.mxu0 %vm57_vm0, %v3637_v9 }
 0x22b   :  { %3283 = vmatprep.subr.mxu1 %v3680_v51  ;;  %3287 = vmatprep.mubr.msk.f32.mxu1 %vm57_vm0, %v3642_v10 }
 0x22c   :  { %3284 = vmatpush3.msra.mxu1 %v3680_v51  ;;  %1137 = vmatprep.subr.mxu0 %v3498_v58 }
 0x22d   :  { %3285 = vmatprep.subr.mxu1 %v3684_v52  ;;  %1138 = vmatpush1.msra.mxu0 %v713_v57 }
 0x22e   :  { %3286 = vmatpush3.msra.mxu1 %v3684_v52  ;;  %1139 = vmatprep.subr.mxu0 %v3498_v58 }
 0x22f   :  { %3288 = vmatmul.mubr.msk.f32.vlgmr.msra.gmra.mxu1 %vm57_vm0, %v3651_v11  ;;  %3290 = vmatprep.subr.mxu1 %v721_v53 }
 0x230   :  { %3291 = vmatpush3.msra.mxu1 %v721_v53  ;;  %3298 = vmatprep.mubr.msk.f32.mxu1 %vm1122_vm6, %v3684_v52 }
 0x231   :  { %3292 = vmatprep.subr.mxu1 %v720_v54  ;;  %1140 = vmatpush1.msra.mxu0 %v712_v59 }
 0x232   :  { %3293 = vmatpush3.msra.mxu1 %v720_v54  ;;  %1141 = vmatprep.subr.mxu0 %v3498_v58  ;;  %v2955_v54 = vld [vmem:[%s4364_s9] ss:$0 sm:$0xff] }
 0x233   :  { %3294 = vmatprep.subr.mxu1 %v719_v55  ;;  %1142 = vmatpush1.msra.mxu0 %v711_v60 }
 0x234   :  { %3295 = vmatpush3.msra.mxu1 %v719_v55  ;;  %1143 = vmatprep.subr.mxu0 %v3498_v58 }
 0x235   :  { %3296 = vmatprep.subr.mxu1 %v718_v56  ;;  %1144 = vmatpush1.msra.mxu0 %v710_v61 }
 0x236   :  { %3297 = vmatpush3.msra.mxu1 %v718_v56  ;;  %1145 = vmatprep.subr.mxu0 %v3498_v58 }
 0x237   :  { %3299 = vmatmul.mubr.msk.f32.vlgmr.msra.gmra.mxu1 %vm1122_vm6, %v3680_v51  ;;  %1146 = vmatpush1.msra.mxu0 %v709_v62 }
 0x238   :  { %3305 = vmatprep.mubr.msk.f32.mxu1 %vm57_vm0, %v3588_v2  ;;  %1147 = vmatprep.subr.mxu0 %v3498_v58 }
 0x239   :  { %1148 = vmatpush1.msra.mxu0 %v708_v63 }
 0x23a   :  { %1149 = vmatprep.subr.mxu0 %v3498_v58 }
 0x23b   :  { %1150 = vmatpush1.msra.mxu0 %v707_v0 }
 0x23c   :  { %1151 = vmatprep.subr.mxu0 %v3498_v58 }
 0x23d   :  { %1152 = vmatpush1.msra.mxu0 %v706_v1 }
 0x23e   :  { %1153 = vmatprep.subr.mxu0 %v3498_v58 }
 0x23f   :  { %1154 = vmatpush1.msra.mxu0 %v705_v12  ;;  %v2972_v12 = vld [vmem:[%s4362_s7 + $0x110] sm:$0xff] }
 0x240   :  { %1155 = vmatprep.subr.mxu0 %v3498_v58 }
 0x241   :  { %1156 = vmatpush1.msra.mxu0 %v704_v13  ;;  %v2971_v13 = vld [vmem:[%s4362_s7 + $0x108] sm:$0xff] }
 0x242   :  { %1157 = vmatprep.subr.mxu0 %v3498_v58 }
 0x243   :  { %1158 = vmatpush1.msra.mxu0 %v703_v14  ;;  %v2970_v14 = vld [vmem:[%s4362_s7 + $0x100] sm:$0xff] }
 0x244   :  { %1159 = vmatprep.subr.mxu0 %v3498_v58 }
 0x245   :  { %1160 = vmatpush1.msra.mxu0 %v702_v15  ;;  %v2969_v15 = vld [vmem:[%s4362_s7 + $0xf8] sm:$0xff] }
 0x246   :  { %1161 = vmatprep.subr.mxu0 %v3498_v58 }
 0x247   :  { %1162 = vmatpush1.msra.mxu0 %v701_v16  ;;  %v2968_v16 = vld [vmem:[%s4362_s7 + $0xf0] sm:$0xff] }
 0x248   :  { %1163 = vmatprep.subr.mxu0 %v3498_v58 }
 0x249   :  { %1164 = vmatpush1.msra.mxu0 %v700_v17  ;;  %v2967_v17 = vld [vmem:[%s4362_s7 + $0xe8] sm:$0xff] }
 0x24a   :  { %1165 = vmatprep.subr.mxu0 %v3498_v58 }
 0x24b   :  { %1166 = vmatpush1.msra.mxu0 %v699_v18  ;;  %v2966_v18 = vld [vmem:[%s4362_s7 + $0xe0] sm:$0xff] }
 0x24c   :  { %1167 = vmatprep.subr.mxu0 %v3498_v58 }
 0x24d   :  { %1168 = vmatpush1.msra.mxu0 %v698_v19  ;;  %v2965_v19 = vld [vmem:[%s4362_s7 + $0xd8] sm:$0xff] }
 0x24e   :  { %1193 = vmatprep.subr.mxu0 %v3498_v58 }
 0x24f   :  { %1194 = vmatpush2.msra.mxu0 %v717_v20  ;;  %v2964_v20 = vld [vmem:[%s4362_s7 + $0xd0] sm:$0xff] }
 0x250   :  { %1195 = vmatprep.subr.mxu0 %v3498_v58 }
 0x251   :  { %1196 = vmatpush2.msra.mxu0 %v716_v21  ;;  %v2963_v21 = vld [vmem:[%s4362_s7 + $0xc8] sm:$0xff] }
 0x252   :  { %1197 = vmatprep.subr.mxu0 %v3498_v58 }
 0x253   :  { %1198 = vmatpush2.msra.mxu0 %v715_v22  ;;  %v2962_v22 = vld [vmem:[%s4362_s7 + $0xc0] sm:$0xff] }
 0x254   :  { %1199 = vmatprep.subr.mxu0 %v3498_v58 }
 0x255   :  { %1200 = vmatpush2.msra.mxu0 %v714_v23  ;;  %v2961_v23 = vld [vmem:[%s4362_s7 + $0xb8] sm:$0xff] }
 0x256   :  { %3336 = vmatprep.subr.mxu0 %v2981_v46 }
 0x2e4   :  { %v3261_v24 = vpop.f32.mrf.mxu1  ;;  %v3268_v25 = vpop.f32.mrf.mxu0 }
 0x2e6   :  { %v789_v26 = vpop.f32.mrf.mxu1  ;;  %v864_v27 = vpop.f32.mrf.mxu0 }
 0x2e7   :  { %1100 = vrot.lane.b32.xlu0 %v864_v27, %s3499_s19  ;;  %v2977_v27 = vld [vmem:[%s4362_s7 + $0x138] sm:$0xff] }
 0x2ea   :  { %v3275_v28 = vpop.f32.mrf.mxu1  ;;  %v3282_v29 = vpop.f32.mrf.mxu0 }
 0x2ec   :  { %v939_v30 = vpop.f32.mrf.mxu1  ;;  %v1014_v31 = vpop.f32.mrf.mxu0 }
 0x2ed   :  { %1116 = vrot.lane.b32.xlu0 %v1014_v31, %s3500_s20  ;;  %1108 = vrot.lane.b32.xlu1 %v939_v30, %s3501_s21 }
 0x2ef   :  { %v3289_v32 = vpop.f32.mrf.mxu1 }
 0x2f1   :  { %1110 = vrot.lane.b32.xlu0 %v3275_v28, %s3501_s21  ;;  %1102 = vrot.lane.b32.xlu1 %v3268_v25, %s3499_s19  ;;  %v1089_v33 = vpop.f32.mrf.mxu1  ;;  %v2959_v25 = vld [vmem:[%s4362_s7 + $0xa8] sm:$0xff]  ;;  %v2976_v28 = vld [vmem:[%s4362_s7 + $0x130] sm:$0xff] }
 0x2f2   :  { %2953 = vmatprep.mubr.msk.f32.mxu0 %vm1122_vm6, %v1089_v33 }
 0x2f5   :  { %1118 = vrot.lane.b32.xlu1 %v3282_v29, %s3500_s20  ;;  %v2975_v29 = vld [vmem:[%s4362_s7 + $0x128] sm:$0xff] }
 0x2f7   :  { %v3300_v50 = vpop.f32.mrf.mxu1 }
 0x2f8   :  { %v1296_v60 = vadd.f32 %v3300_v50, %v2955_v54 }
 0x2f9   :  { %v1290_v53 = vpop.f32.mrf.mxu1 }
 0x2fa   :  { %v1291_v55 = vadd.f32 %v2955_v54, %v1290_v53 }
 0x359   :  { %v1101_v34 = vpop.permute.xlu0 %1100 }
 0x35a   :  { %v1123_v35 = vsel %vm1122_vm6, %v789_v26, %v1101_v34  ;;  %v2958_v26 = vld [vmem:[%s4362_s7 + $0xa0] sm:$0xff] }
 0x35f   :  { %v1117_v36 = vpop.permute.xlu0 %1116  ;;  %v1109_v37 = vpop.permute.xlu1 %1108 }
 0x360   :  { %v1126_v38 = vsel %vm1125_vm7, %v1123_v35, %v1109_v37 }
 0x361   :  { %v1129_v39 = vsel %vm1128_vm8, %v1126_v38, %v1117_v36 }
 0x362   :  { %1202 = vmatmul.mubr.f32.vlgmr.msra.gmra.mxu0 %v1129_v39 }
 0x363   :  { %v1103_v40 = vpop.permute.xlu1 %1102  ;;  %2954 = vmatprep.mubr.msk.f32.mxu0 %vm1122_vm6, %v3289_v32  ;;  %v1111_v41 = vpop.permute.xlu0 %1110  ;;  %3337 = vmatpush3.msra.mxu0 %v2981_v46  ;;  %v2974_v32 = vld [vmem:[%s4362_s7 + $0x120] sm:$0xff] }
 0x364   :  { %v1124_v42 = vsel %vm1122_vm6, %v3261_v24, %v1103_v40  ;;  %3338 = vmatprep.subr.mxu0 %v2980_v47  ;;  %v2960_v24 = vld [vmem:[%s4362_s7 + $0xb0] sm:$0xff] }
 0x365   :  { %v1127_v44 = vsel %vm1125_vm7, %v1124_v42, %v1111_v41  ;;  %3339 = vmatpush3.msra.mxu0 %v2980_v47 }
 0x366   :  { %3340 = vmatprep.subr.mxu0 %v2979_v48 }
 0x367   :  { %v1119_v43 = vpop.permute.xlu1 %1118  ;;  %3341 = vmatpush3.msra.mxu0 %v2979_v48 }
 0x368   :  { %v1130_v45 = vsel %vm1128_vm8, %v1127_v44, %v1119_v43  ;;  %3342 = vmatprep.subr.mxu0 %v2978_v49 }
 0x369   :  { %1207 = vmatmul.mubr.f32.gmra.mxu0 %v1130_v45 }
 0x36a   :  { %3343 = vmatpush3.msra.mxu0 %v2978_v49 }
 0x422   :  { %v1203_v56 = vpop.f32.mrf.mxu0 }
 0x423   :  { %v1299_v57 = vadd.f32 %v1291_v55, %v1203_v56  ;;  %v3021_v55 = vld [vmem:[%s4363_s8 + $0x58] sm:$0xff]  ;;  %v3020_v56 = vld [vmem:[%s4363_s8 + $0x50] sm:$0xff] }
 0x424   :  { %v1205_v59 = vpop.f32.mrf.mxu0 }
 0x425   :  { %3456 = vtanh.f32 %v1299_v57  ;;  %v3019_v57 = vld [vmem:[%s4363_s8 + $0x48] sm:$0xff]  ;;  %v3018_v59 = vld [vmem:[%s4363_s8 + $0x40] sm:$0xff] }
 0x429   :  { %v1208_v61 = vpop.f32.mrf.mxu0 }
 0x42a   :  { %v1300_v62 = vadd.f32 %v1296_v60, %v1208_v61 }
 0x42b   :  { %v1210_v63 = vpop.f32.mrf.mxu0 }
 0x42c   :  { %3458 = vtanh.f32 %v1300_v62  ;;  %v2995_v62 = vld [vmem:[%s4364_s9 + $0x1] ss:$0 sm:$0xff] }
 0x432   :  { %v3847_v0 = vpop.eup %3456 }
 0x433   :  { %3344 = vmatprep.mubr.msk.f32.mxu0 %vm1122_vm6, %v3847_v0 }
 0x439   :  { %v3851_v1 = vpop.eup %3458 }
 0x43a   :  { %3301 = vmatprep.subr.mxu1 %v3851_v1  ;;  %3345 = vmatmul.mubr.msk.f32.vlgmr.msra.gmra.mxu0 %vm1122_vm6, %v3851_v1 }
 0x43b   :  { %3302 = vmatpush3.msra.mxu1 %v3851_v1  ;;  %3351 = vmatprep.mubr.msk.f32.mxu0 %vm57_vm0, %v3588_v2  ;;  %v2973_v2 = vld [vmem:[%s4362_s7 + $0x118] sm:$0xff] }
 0x43c   :  { %3303 = vmatprep.subr.mxu1 %v3847_v0 }
 0x43d   :  { %3304 = vmatpush3.msra.mxu1 %v3847_v0 }
 0x43e   :  { %3306 = vmatmul.mubr.msk.f32.vlgmr.msra.gmra.mxu1 %vm57_vm0, %v3595_v3  ;;  %3308 = vmatprep.subr.mxu1 %v3851_v1 }
 0x43f   :  { %3309 = vmatpush3.msra.mxu1 %v3851_v1  ;;  %3312 = vmatprep.mubr.msk.f32.mxu1 %vm57_vm0, %v3600_v4 }
 0x440   :  { %3310 = vmatprep.subr.mxu1 %v3847_v0 }
 0x441   :  { %3311 = vmatpush3.msra.mxu1 %v3847_v0 }
 0x442   :  { %3313 = vmatmul.mubr.msk.f32.vlgmr.msra.gmra.mxu1 %vm57_vm0, %v3609_v5  ;;  %3315 = vmatprep.subr.mxu1 %v3851_v1 }
 0x443   :  { %3316 = vmatpush3.msra.mxu1 %v3851_v1  ;;  %3319 = vmatprep.mubr.msk.f32.mxu1 %vm57_vm0, %v3614_v6 }
 0x444   :  { %3317 = vmatprep.subr.mxu1 %v3847_v0 }
 0x445   :  { %3318 = vmatpush3.msra.mxu1 %v3847_v0 }
 0x446   :  { %3320 = vmatmul.mubr.msk.f32.vlgmr.msra.gmra.mxu1 %vm57_vm0, %v3623_v7  ;;  %3322 = vmatprep.subr.mxu1 %v3851_v1 }
 0x447   :  { %3323 = vmatpush3.msra.mxu1 %v3851_v1  ;;  %3326 = vmatprep.mubr.msk.f32.mxu1 %vm57_vm0, %v3628_v8 }
 0x448   :  { %3324 = vmatprep.subr.mxu1 %v3847_v0 }
 0x449   :  { %3325 = vmatpush3.msra.mxu1 %v3847_v0 }
 0x44a   :  { %3327 = vmatmul.mubr.msk.f32.vlgmr.msra.gmra.mxu1 %vm57_vm0, %v3637_v9  ;;  %3329 = vmatprep.subr.mxu1 %v3851_v1 }
 0x44b   :  { %3330 = vmatpush3.msra.mxu1 %v3851_v1  ;;  %3333 = vmatprep.mubr.msk.f32.mxu1 %vm57_vm0, %v3642_v10 }
 0x44c   :  { %3331 = vmatprep.subr.mxu1 %v3847_v0 }
 0x44d   :  { %3332 = vmatpush3.msra.mxu1 %v3847_v0 }
 0x44e   :  { %3334 = vmatmul.mubr.msk.f32.vlgmr.msra.gmra.mxu1 %vm57_vm0, %v3651_v11  ;;  %1742 = vmatprep.subr.mxu1 %v3498_v58 }
 0x44f   :  { %1743 = vmatpush1.msra.mxu1 %v2973_v2 }
 0x450   :  { %1744 = vmatprep.subr.mxu1 %v3498_v58 }
 0x451   :  { %1745 = vmatpush1.msra.mxu1 %v2972_v12 }
 0x452   :  { %1746 = vmatprep.subr.mxu1 %v3498_v58 }
 0x453   :  { %1747 = vmatpush1.msra.mxu1 %v2971_v13 }
 0x454   :  { %1748 = vmatprep.subr.mxu1 %v3498_v58 }
 0x455   :  { %1749 = vmatpush1.msra.mxu1 %v2970_v14 }
 0x456   :  { %1750 = vmatprep.subr.mxu1 %v3498_v58 }
 0x457   :  { %1751 = vmatpush1.msra.mxu1 %v2969_v15 }
 0x458   :  { %1752 = vmatprep.subr.mxu1 %v3498_v58 }
 0x459   :  { %1753 = vmatpush1.msra.mxu1 %v2968_v16 }
 0x45a   :  { %1754 = vmatprep.subr.mxu1 %v3498_v58 }
 0x45b   :  { %1755 = vmatpush1.msra.mxu1 %v2967_v17 }
 0x45c   :  { %1756 = vmatprep.subr.mxu1 %v3498_v58 }
 0x45d   :  { %1757 = vmatpush1.msra.mxu1 %v2966_v18 }
 0x45e   :  { %1758 = vmatprep.subr.mxu1 %v3498_v58 }
 0x45f   :  { %1759 = vmatpush1.msra.mxu1 %v2965_v19 }
 0x460   :  { %1760 = vmatprep.subr.mxu1 %v3498_v58 }
 0x461   :  { %1761 = vmatpush1.msra.mxu1 %v2964_v20  ;;  %v3004_v20 = vld [vmem:[%s4362_s7 + $0x170] sm:$0xff] }
 0x462   :  { %1762 = vmatprep.subr.mxu1 %v3498_v58 }
 0x463   :  { %1763 = vmatpush1.msra.mxu1 %v2963_v21  ;;  %v3003_v21 = vld [vmem:[%s4362_s7 + $0x168] sm:$0xff] }
 0x464   :  { %1764 = vmatprep.subr.mxu1 %v3498_v58 }
 0x465   :  { %1765 = vmatpush1.msra.mxu1 %v2962_v22  ;;  %v3002_v22 = vld [vmem:[%s4362_s7 + $0x160] sm:$0xff] }
 0x466   :  { %1766 = vmatprep.subr.mxu1 %v3498_v58 }
 0x467   :  { %1767 = vmatpush1.msra.mxu1 %v2961_v23  ;;  %v3001_v23 = vld [vmem:[%s4362_s7 + $0x158] sm:$0xff] }
 0x468   :  { %1768 = vmatprep.subr.mxu1 %v3498_v58 }
 0x469   :  { %1769 = vmatpush1.msra.mxu1 %v2960_v24  ;;  %v3000_v24 = vld [vmem:[%s4362_s7 + $0x150] sm:$0xff] }
 0x46a   :  { %1770 = vmatprep.subr.mxu1 %v3498_v58 }
 0x46b   :  { %1771 = vmatpush1.msra.mxu1 %v2959_v25  ;;  %v2999_v25 = vld [vmem:[%s4362_s7 + $0x148] sm:$0xff] }
 0x46c   :  { %1772 = vmatprep.subr.mxu1 %v3498_v58 }
 0x46d   :  { %1773 = vmatpush1.msra.mxu1 %v2958_v26  ;;  %v2998_v26 = vld [vmem:[%s4362_s7 + $0x140] sm:$0xff] }
 0x46e   :  { %1798 = vmatprep.subr.mxu1 %v3498_v58 }
 0x46f   :  { %1799 = vmatpush2.msra.mxu1 %v2977_v27  ;;  %v3017_v27 = vld [vmem:[%s4362_s7 + $0x1d8] sm:$0xff] }
 0x470   :  { %1800 = vmatprep.subr.mxu1 %v3498_v58 }
 0x471   :  { %1801 = vmatpush2.msra.mxu1 %v2976_v28  ;;  %v3016_v28 = vld [vmem:[%s4362_s7 + $0x1d0] sm:$0xff] }
 0x472   :  { %1802 = vmatprep.subr.mxu1 %v3498_v58 }
 0x473   :  { %1803 = vmatpush2.msra.mxu1 %v2975_v29  ;;  %v3015_v29 = vld [vmem:[%s4362_s7 + $0x1c8] sm:$0xff] }
 0x474   :  { %1804 = vmatprep.subr.mxu1 %v3498_v58 }
 0x475   :  { %1805 = vmatpush2.msra.mxu1 %v2974_v32  ;;  %v3014_v32 = vld [vmem:[%s4362_s7 + $0x1c0] sm:$0xff] }
 0x476   :  { %3382 = vmatprep.subr.mxu1 %v3021_v55 }
 0x4fa   :  { %v3346_v60 = vpop.f32.mrf.mxu0 }
 0x4fb   :  { %v1901_v14 = vadd.f32 %v3346_v60, %v2995_v62 }
 0x4fc   :  { %v1895_v61 = vpop.f32.mrf.mxu0 }
 0x4fd   :  { %v1896_v63 = vadd.f32 %v2995_v62, %v1895_v61 }
 0x4fe   :  { %v3307_v30 = vpop.f32.mrf.mxu1 }
 0x500   :  { %v1397_v31 = vpop.f32.mrf.mxu1 }
 0x502   :  { %v3314_v33 = vpop.f32.mrf.mxu1 }
 0x504   :  { %v1472_v34 = vpop.f32.mrf.mxu1 }
 0x505   :  { %1708 = vrot.lane.b32.xlu0 %v1472_v34, %s3499_s19 }
 0x506   :  { %v3321_v35 = vpop.f32.mrf.mxu1 }
 0x508   :  { %v1547_v36 = vpop.f32.mrf.mxu1 }
 0x509   :  { %1716 = vrot.lane.b32.xlu1 %v1547_v36, %s3501_s21 }
 0x50a   :  { %v3328_v37 = vpop.f32.mrf.mxu1 }
 0x50c   :  { %v1622_v38 = vpop.f32.mrf.mxu1 }
 0x50d   :  { %1710 = vrot.lane.b32.xlu1 %v3314_v33, %s3499_s19  ;;  %1724 = vrot.lane.b32.xlu0 %v1622_v38, %s3500_s20 }
 0x50e   :  { %v3335_v39 = vpop.f32.mrf.mxu1 }
 0x510   :  { %v1697_v40 = vpop.f32.mrf.mxu1 }
 0x511   :  { %1726 = vrot.lane.b32.xlu1 %v3328_v37, %s3500_s20  ;;  %1718 = vrot.lane.b32.xlu0 %v3321_v35, %s3501_s21 }
 0x512   :  { %2993 = vmatprep.mubr.msk.f32.mxu1 %vm1122_vm6, %v1697_v40 }
 0x577   :  { %v1709_v41 = vpop.permute.xlu0 %1708 }
 0x578   :  { %v1730_v43 = vsel %vm1122_vm6, %v1397_v31, %v1709_v41 }
 0x57b   :  { %v1717_v42 = vpop.permute.xlu1 %1716 }
 0x57c   :  { %v1732_v44 = vsel %vm1125_vm7, %v1730_v43, %v1717_v42 }
 0x57f   :  { %v1711_v45 = vpop.permute.xlu1 %1710  ;;  %v1725_v46 = vpop.permute.xlu0 %1724 }
 0x580   :  { %v1734_v47 = vsel %vm1128_vm8, %v1732_v44, %v1725_v46  ;;  %v1731_v48 = vsel %vm1122_vm6, %v3307_v30, %v1711_v45 }
 0x581   :  { %1807 = vmatmul.mubr.f32.vlgmr.msra.gmra.mxu1 %v1734_v47 }
 0x582   :  { %2994 = vmatprep.mubr.msk.f32.mxu1 %vm1122_vm6, %v3335_v39  ;;  %3383 = vmatpush3.msra.mxu1 %v3021_v55  ;;  %v3035_v55 = vld [vmem:[%s4364_s9 + $0x2] ss:$0 sm:$0xff] }
 0x583   :  { %v1727_v49 = vpop.permute.xlu1 %1726  ;;  %v1719_v50 = vpop.permute.xlu0 %1718  ;;  %3384 = vmatprep.subr.mxu1 %v3020_v56 }
 0x584   :  { %v1733_v53 = vsel %vm1125_vm7, %v1731_v48, %v1719_v50  ;;  %3385 = vmatpush3.msra.mxu1 %v3020_v56 }
 0x585   :  { %v1735_v54 = vsel %vm1128_vm8, %v1733_v53, %v1727_v49  ;;  %3386 = vmatprep.subr.mxu1 %v3019_v57 }
 0x586   :  { %1812 = vmatmul.mubr.f32.gmra.mxu1 %v1735_v54 }
 0x587   :  { %3387 = vmatpush3.msra.mxu1 %v3019_v57 }
 0x588   :  { %3388 = vmatprep.subr.mxu1 %v3018_v59 }
 0x589   :  { %3389 = vmatpush3.msra.mxu1 %v3018_v59 }
 0x58a   :  { %3393 = vmatprep.subr.mxu1 %v3498_v58 }
 0x641   :  { %v1808_v2 = vpop.f32.mrf.mxu1 }
 0x642   :  { %v1904_v12 = vadd.f32 %v1896_v63, %v1808_v2 }
 0x643   :  { %v1810_v13 = vpop.f32.mrf.mxu1 }
 0x644   :  { %3460 = vtanh.f32 %v1904_v12 }
 0x646   :  { %v1813_v15 = vpop.f32.mrf.mxu1 }
 0x647   :  { %v1905_v16 = vadd.f32 %v1901_v14, %v1813_v15 }
 0x648   :  { %v1815_v17 = vpop.f32.mrf.mxu1 }
 0x649   :  { %3462 = vtanh.f32 %v1905_v16 }
 0x651   :  { %v4005_v18 = vpop.eup %3460 }
 0x652   :  { %3390 = vmatprep.mubr.msk.f32.mxu1 %vm1122_vm6, %v4005_v18 }
 0x656   :  { %v4009_v19 = vpop.eup %3462 }
 0x657   :  { %3347 = vmatprep.subr.mxu0 %v4009_v19  ;;  %3391 = vmatmul.mubr.msk.f32.vlgmr.msra.gmra.mxu1 %vm1122_vm6, %v4009_v19 }
 0x658   :  { %3348 = vmatpush3.msra.mxu0 %v4009_v19  ;;  %3397 = vmatprep.mubr.msk.f32.mxu1 %vm3502_vm9, %v3498_v58 }
 0x659   :  { %3349 = vmatprep.subr.mxu0 %v4005_v18 }
 0x65a   :  { %3350 = vmatpush3.msra.mxu0 %v4005_v18 }
 0x65b   :  { %3352 = vmatmul.mubr.msk.f32.vlgmr.msra.gmra.mxu0 %vm57_vm0, %v3595_v3  ;;  %3354 = vmatprep.subr.mxu0 %v4009_v19  ;;  %v3013_v3 = vld [vmem:[%s4362_s7 + $0x1b8] sm:$0xff] }
 0x65c   :  { %3355 = vmatpush3.msra.mxu0 %v4009_v19  ;;  %3358 = vmatprep.mubr.msk.f32.mxu0 %vm57_vm0, %v3600_v4  ;;  %v3012_v4 = vld [vmem:[%s4362_s7 + $0x1b0] sm:$0xff] }
 0x65d   :  { %3356 = vmatprep.subr.mxu0 %v4005_v18 }
 0x65e   :  { %3357 = vmatpush3.msra.mxu0 %v4005_v18 }
 0x65f   :  { %3359 = vmatmul.mubr.msk.f32.vlgmr.msra.gmra.mxu0 %vm57_vm0, %v3609_v5  ;;  %3361 = vmatprep.subr.mxu0 %v4009_v19  ;;  %v3011_v5 = vld [vmem:[%s4362_s7 + $0x1a8] sm:$0xff] }
 0x660   :  { %3362 = vmatpush3.msra.mxu0 %v4009_v19  ;;  %3365 = vmatprep.mubr.msk.f32.mxu0 %vm57_vm0, %v3614_v6  ;;  %v3010_v6 = vld [vmem:[%s4362_s7 + $0x1a0] sm:$0xff] }
 0x661   :  { %3363 = vmatprep.subr.mxu0 %v4005_v18 }
 0x662   :  { %3364 = vmatpush3.msra.mxu0 %v4005_v18 }
 0x663   :  { %3366 = vmatmul.mubr.msk.f32.vlgmr.msra.gmra.mxu0 %vm57_vm0, %v3623_v7  ;;  %3368 = vmatprep.subr.mxu0 %v4009_v19  ;;  %v3009_v7 = vld [vmem:[%s4362_s7 + $0x198] sm:$0xff] }
 0x664   :  { %3369 = vmatpush3.msra.mxu0 %v4009_v19  ;;  %3372 = vmatprep.mubr.msk.f32.mxu0 %vm57_vm0, %v3628_v8  ;;  %v3008_v8 = vld [vmem:[%s4362_s7 + $0x190] sm:$0xff] }
 0x665   :  { %3370 = vmatprep.subr.mxu0 %v4005_v18 }
 0x666   :  { %3371 = vmatpush3.msra.mxu0 %v4005_v18 }
 0x667   :  { %3373 = vmatmul.mubr.msk.f32.vlgmr.msra.gmra.mxu0 %vm57_vm0, %v3637_v9  ;;  %3375 = vmatprep.subr.mxu0 %v4009_v19  ;;  %v3007_v9 = vld [vmem:[%s4362_s7 + $0x188] sm:$0xff] }
 0x668   :  { %3376 = vmatpush3.msra.mxu0 %v4009_v19  ;;  %3379 = vmatprep.mubr.msk.f32.mxu0 %vm57_vm0, %v3642_v10  ;;  %v3006_v10 = vld [vmem:[%s4362_s7 + $0x180] sm:$0xff] }
 0x669   :  { %3377 = vmatprep.subr.mxu0 %v4005_v18 }
 0x66a   :  { %3378 = vmatpush3.msra.mxu0 %v4005_v18 }
 0x66b   :  { %3380 = vmatmul.mubr.msk.f32.vlgmr.msra.gmra.mxu0 %vm57_vm0, %v3651_v11  ;;  %2347 = vmatprep.subr.mxu0 %v3498_v58  ;;  %v3005_v11 = vld [vmem:[%s4362_s7 + $0x178] sm:$0xff] }
 0x66c   :  { %2348 = vmatpush1.msra.mxu0 %v3013_v3 }
 0x66d   :  { %2349 = vmatprep.subr.mxu0 %v3498_v58 }
 0x66e   :  { %2350 = vmatpush1.msra.mxu0 %v3012_v4 }
 0x66f   :  { %2351 = vmatprep.subr.mxu0 %v3498_v58 }
 0x670   :  { %2352 = vmatpush1.msra.mxu0 %v3011_v5 }
 0x671   :  { %2353 = vmatprep.subr.mxu0 %v3498_v58 }
 0x672   :  { %2354 = vmatpush1.msra.mxu0 %v3010_v6 }
 0x673   :  { %2355 = vmatprep.subr.mxu0 %v3498_v58 }
 0x674   :  { %2356 = vmatpush1.msra.mxu0 %v3009_v7 }
 0x675   :  { %2357 = vmatprep.subr.mxu0 %v3498_v58 }
 0x676   :  { %2358 = vmatpush1.msra.mxu0 %v3008_v8  ;;  %v2539_v8 = vld [vmem:[%s4357_s2] sm:$0x3] }
 0x677   :  { %2359 = vmatprep.subr.mxu0 %v3498_v58 }
 0x678   :  { %2360 = vmatpush1.msra.mxu0 %v3007_v9  ;;  %v2718_v9 = vld [vmem:[%s4365_s10 + $0xf8] sm:$0xff] }
 0x679   :  { %2361 = vmatprep.subr.mxu0 %v3498_v58 }
 0x67a   :  { %2362 = vmatpush1.msra.mxu0 %v3006_v10  ;;  %v2702_v10 = vld [vmem:[%s4365_s10 + $0x78] sm:$0xff] }
 0x67b   :  { %2363 = vmatprep.subr.mxu0 %v3498_v58 }
 0x67c   :  { %2364 = vmatpush1.msra.mxu0 %v3005_v11  ;;  %v2717_v11 = vld [vmem:[%s4365_s10 + $0xf0] sm:$0xff] }
 0x67d   :  { %2365 = vmatprep.subr.mxu0 %v3498_v58 }
 0x67e   :  { %2366 = vmatpush1.msra.mxu0 %v3004_v20  ;;  %v2701_v20 = vld [vmem:[%s4365_s10 + $0x70] sm:$0xff] }
 0x67f   :  { %2367 = vmatprep.subr.mxu0 %v3498_v58 }
 0x680   :  { %2368 = vmatpush1.msra.mxu0 %v3003_v21  ;;  %v2716_v21 = vld [vmem:[%s4365_s10 + $0xe8] sm:$0xff] }
 0x681   :  { %2369 = vmatprep.subr.mxu0 %v3498_v58 }
 0x682   :  { %2370 = vmatpush1.msra.mxu0 %v3002_v22  ;;  %v2700_v22 = vld [vmem:[%s4365_s10 + $0x68] sm:$0xff] }
 0x683   :  { %2371 = vmatprep.subr.mxu0 %v3498_v58 }
 0x684   :  { %2372 = vmatpush1.msra.mxu0 %v3001_v23  ;;  %v2715_v23 = vld [vmem:[%s4365_s10 + $0xe0] sm:$0xff] }
 0x685   :  { %2373 = vmatprep.subr.mxu0 %v3498_v58 }
 0x686   :  { %2374 = vmatpush1.msra.mxu0 %v3000_v24  ;;  %v2699_v24 = vld [vmem:[%s4365_s10 + $0x60] sm:$0xff] }
 0x687   :  { %2375 = vmatprep.subr.mxu0 %v3498_v58 }
 0x688   :  { %2376 = vmatpush1.msra.mxu0 %v2999_v25  ;;  %v2714_v25 = vld [vmem:[%s4365_s10 + $0xd8] sm:$0xff] }
 0x689   :  { %2377 = vmatprep.subr.mxu0 %v3498_v58 }
 0x68a   :  { %2378 = vmatpush1.msra.mxu0 %v2998_v26  ;;  %v2698_v26 = vld [vmem:[%s4365_s10 + $0x58] sm:$0xff] }
 0x68b   :  { %2403 = vmatprep.subr.mxu0 %v3498_v58 }
 0x68c   :  { %2404 = vmatpush2.msra.mxu0 %v3017_v27  ;;  %v2713_v27 = vld [vmem:[%s4365_s10 + $0xd0] sm:$0xff] }
 0x68d   :  { %2405 = vmatprep.subr.mxu0 %v3498_v58 }
 0x68e   :  { %2406 = vmatpush2.msra.mxu0 %v3016_v28  ;;  %v2697_v28 = vld [vmem:[%s4365_s10 + $0x50] sm:$0xff] }
 0x68f   :  { %2407 = vmatprep.subr.mxu0 %v3498_v58 }
 0x690   :  { %2408 = vmatpush2.msra.mxu0 %v3015_v29  ;;  %v2712_v29 = vld [vmem:[%s4365_s10 + $0xc8] sm:$0xff] }
 0x691   :  { %2409 = vmatprep.subr.mxu0 %v3498_v58 }
 0x692   :  { %2410 = vmatpush2.msra.mxu0 %v3014_v32  ;;  %v2695_v32 = vld [vmem:[%s4365_s10 + $0x40] sm:$0xff] }
 0x693   :  { %3407 = vmatprep.subr.mxu0 %v3498_v58 }
 0x717   :  { %v3392_v53 = vpop.f32.mrf.mxu1 }
 0x718   :  { %v2506_v59 = vadd.f32 %v3392_v53, %v3035_v55  ;;  %v2808_v53 = vld [vmem:[%s4367_s12 + $0x58] sm:$0xff] }
 0x719   :  { %v2500_v57 = vpop.f32.mrf.mxu1 }
 0x71a   :  { %v2501_v61 = vadd.f32 %v3035_v55, %v2500_v57  ;;  %v2806_v55 = vld [vmem:[%s4367_s12 + $0x48] sm:$0xff]  ;;  %v2804_v57 = vld [vmem:[%s4367_s12 + $0x38] sm:$0xff] }
 0x71b   :  { %v3353_v30 = vpop.f32.mrf.mxu0 }
 0x71d   :  { %v2002_v31 = vpop.f32.mrf.mxu0 }
 0x71f   :  { %v3360_v33 = vpop.f32.mrf.mxu0 }
 0x721   :  { %v2077_v34 = vpop.f32.mrf.mxu0 }
 0x722   :  { %2313 = vrot.lane.b32.xlu0 %v2077_v34, %s3499_s19  ;;  %v2694_v34 = vld [vmem:[%s4365_s10 + $0x38] sm:$0xff] }
 0x723   :  { %v3367_v35 = vpop.f32.mrf.mxu0 }
 0x725   :  { %v2152_v36 = vpop.f32.mrf.mxu0 }
 0x726   :  { %2321 = vrot.lane.b32.xlu1 %v2152_v36, %s3501_s21  ;;  %v2693_v36 = vld [vmem:[%s4365_s10 + $0x30] sm:$0xff] }
 0x727   :  { %v3374_v37 = vpop.f32.mrf.mxu0 }
 0x729   :  { %v2227_v38 = vpop.f32.mrf.mxu0 }
 0x72a   :  { %2315 = vrot.lane.b32.xlu1 %v3360_v33, %s3499_s19  ;;  %2329 = vrot.lane.b32.xlu0 %v2227_v38, %s3500_s20  ;;  %v2710_v33 = vld [vmem:[%s4365_s10 + $0xb8] sm:$0xff]  ;;  %v2692_v38 = vld [vmem:[%s4365_s10 + $0x28] sm:$0xff] }
 0x72b   :  { %v3381_v39 = vpop.f32.mrf.mxu0 }
 0x72d   :  { %v2302_v40 = vpop.f32.mrf.mxu0 }
 0x72e   :  { %2331 = vrot.lane.b32.xlu1 %v3374_v37, %s3500_s20  ;;  %2323 = vrot.lane.b32.xlu0 %v3367_v35, %s3501_s21  ;;  %v2709_v35 = vld [vmem:[%s4365_s10 + $0xb0] sm:$0xff]  ;;  %v2708_v37 = vld [vmem:[%s4365_s10 + $0xa8] sm:$0xff] }
 0x72f   :  { %3033 = vmatprep.mubr.msk.f32.mxu0 %vm1122_vm6, %v2302_v40  ;;  %v2691_v40 = vld [vmem:[%s4365_s10 + $0x20] sm:$0xff] }
 0x732   :  { %2521 = vrot.lane.b32.xlu1 %v4009_v19, %s3501_s21  ;;  %2515 = vrot.lane.b32.xlu0 %v3851_v1, %s3499_s19 }
 0x736   :  { %2513 = vrot.lane.b32.xlu0 %v3847_v0, %s3499_s19 }
 0x73a   :  { %2519 = vrot.lane.b32.xlu0 %v4005_v18, %s3501_s21 }
 0x794   :  { %v2314_v41 = vpop.permute.xlu0 %2313 }
 0x795   :  { %v2335_v43 = vsel %vm1122_vm6, %v2002_v31, %v2314_v41  ;;  %v2711_v31 = vld [vmem:[%s4365_s10 + $0xc0] sm:$0xff]  ;;  %v2706_v41 = vld [vmem:[%s4365_s10 + $0x98] sm:$0xff] }
 0x798   :  { %v2322_v42 = vpop.permute.xlu1 %2321 }
 0x799   :  { %v2337_v44 = vsel %vm1125_vm7, %v2335_v43, %v2322_v42  ;;  %v2690_v42 = vld [vmem:[%s4365_s10 + $0x18] sm:$0xff]  ;;  %v2705_v43 = vld [vmem:[%s4365_s10 + $0x90] sm:$0xff] }
 0x79c   :  { %v2316_v45 = vpop.permute.xlu1 %2315  ;;  %v2330_v46 = vpop.permute.xlu0 %2329 }
 0x79d   :  { %v2339_v47 = vsel %vm1128_vm8, %v2337_v44, %v2330_v46  ;;  %v2336_v1 = vsel %vm1122_vm6, %v3353_v30, %v2316_v45  ;;  %v2696_v30 = vld [vmem:[%s4365_s10 + $0x48] sm:$0xff]  ;;  %v2689_v44 = vld [vmem:[%s4365_s10 + $0x10] sm:$0xff] }
 0x79e   :  { %2412 = vmatmul.mubr.f32.vlgmr.msra.gmra.mxu0 %v2339_v47  ;;  %v2704_v45 = vld [vmem:[%s4365_s10 + $0x88] sm:$0xff]  ;;  %v2703_v47 = vld [vmem:[%s4365_s10 + $0x80] sm:$0xff] }
 0x79f   :  { %3034 = vmatprep.mubr.msk.f32.mxu0 %vm1122_vm6, %v3381_v39  ;;  %v2707_v39 = vld [vmem:[%s4365_s10 + $0xa0] sm:$0xff]  ;;  %v2688_v46 = vld [vmem:[%s4365_s10 + $0x8] sm:$0xff] }
 0x7a0   :  { %v2332_v48 = vpop.permute.xlu1 %2331  ;;  %v2324_v0 = vpop.permute.xlu0 %2323 }
 0x7a1   :  { %v2338_v49 = vsel %vm1125_vm7, %v2336_v1, %v2324_v0  ;;  %v2687_v1 = vld [vmem:[%s4365_s10] sm:$0xff]  ;;  %v2811_v0 = vld [vmem:[%s4367_s12 + $0x70] sm:$0xff] }
 0x7a2   :  { %v2340_v50 = vsel %vm1128_vm8, %v2338_v49, %v2332_v48  ;;  %v2812_v48 = vld [vmem:[%s4367_s12 + $0x78] sm:$0xff]  ;;  %v2810_v49 = vld [vmem:[%s4367_s12 + $0x68] sm:$0xff] }
 0x7a3   :  { %2417 = vmatmul.mubr.f32.gmra.mxu0 %v2340_v50  ;;  %v2809_v50 = vld [vmem:[%s4367_s12 + $0x60] sm:$0xff] }
 0x7a4   :  { %3439 = vmatprep.mubr.msk.f32.mxu0 %vm3502_vm9, %v3498_v58  ;;  %v2516_v14 = vpop.permute.xlu0 %2515  ;;  %v2522_v16 = vpop.permute.xlu1 %2521  ;;  %3408 = vmatpush3.msra.mxu0 %v2812_v48 }
 0x7a5   :  { %v2534_v17 = vsel %vm1122_vm6, %v3680_v51, %v2516_v14  ;;  %3409 = vmatprep.subr.mxu0 %v3498_v58  ;;  %v2799_v14 = vld [vmem:[%s4367_s12 + $0x10] sm:$0xff] }
 0x7a6   :  { %v2536_v18 = vsel %vm1125_vm7, %v2534_v17, %v2522_v16  ;;  %3410 = vmatpush3.msra.mxu0 %v2811_v0  ;;  %v2797_v16 = vld [vmem:[%s4367_s12] sm:$0xff] }
 0x7a7   :  { %3411 = vmatprep.subr.mxu0 %v3498_v58 }
 0x7a8   :  { %v2514_v15 = vpop.permute.xlu0 %2513  ;;  %3412 = vmatpush3.msra.mxu0 %v2810_v49 }
 0x7a9   :  { %v2533_v5 = vsel %vm1122_vm6, %v3684_v52, %v2514_v15  ;;  %v2613_v52 = vld [vmem:[%s4358_s3] sm:$0x3]  ;;  %3413 = vmatprep.subr.mxu0 %v3498_v58  ;;  %v2798_v15 = vld [vmem:[%s4367_s12 + $0x8] sm:$0xff] }
 0x7aa   :  { %3414 = vmatpush3.msra.mxu0 %v2809_v50 }
 0x7ab   :  { %3415 = vmatprep.subr.mxu0 %v3498_v58 }
 0x7ac   :  { %v2520_v3 = vpop.permute.xlu0 %2519  ;;  %3416 = vmatpush3.msra.mxu0 %v2808_v53 }
 0x7ad   :  { %v2535_v6 = vsel %vm1125_vm7, %v2533_v5, %v2520_v3  ;;  %3417 = vmatprep.subr.mxu0 %v3498_v58 }
 0x85e   :  { %v2413_v54 = vpop.f32.mrf.mxu0 }
 0x85f   :  { %v2509_v2 = vadd.f32 %v2501_v61, %v2413_v54  ;;  %v2807_v54 = vld [vmem:[%s4367_s12 + $0x50] sm:$0xff] }
 0x860   :  { %v2415_v56 = vpop.f32.mrf.mxu0  ;;  %3418 = vmatpush3.msra.mxu0 %v2807_v54 }
 0x861   :  { %3419 = vmatprep.subr.mxu0 %v3498_v58  ;;  %v2805_v56 = vld [vmem:[%s4367_s12 + $0x40] sm:$0xff] }
 0x862   :  { %3420 = vmatpush3.msra.mxu0 %v2806_v55 }
 0x863   :  { %v2418_v60 = vpop.f32.mrf.mxu0  ;;  %3421 = vmatprep.subr.mxu0 %v3498_v58 }
 0x864   :  { %v2510_v62 = vadd.f32 %v2506_v59, %v2418_v60  ;;  %3422 = vmatpush3.msra.mxu0 %v2805_v56  ;;  %v2803_v59 = vld [vmem:[%s4367_s12 + $0x30] sm:$0xff]  ;;  %v2802_v60 = vld [vmem:[%s4367_s12 + $0x28] sm:$0xff] }
 0x865   :  { %v2420_v63 = vpop.f32.mrf.mxu0  ;;  %3423 = vmatprep.subr.mxu0 %v3498_v58 }
 0x866   :  { %3464 = vtanh.f32 %v2510_v62  ;;  %3424 = vmatpush3.msra.mxu0 %v2804_v57 }
 0x867   :  { %3466 = vtanh.f32 %v2509_v2  ;;  %3425 = vmatprep.subr.mxu0 %v3498_v58 }
 0x868   :  { %3426 = vmatpush3.msra.mxu0 %v2803_v59 }
 0x869   :  { %3427 = vmatprep.subr.mxu0 %v3498_v58 }
 0x86a   :  { %3428 = vmatpush3.msra.mxu0 %v2802_v60 }
 0x86b   :  { %3429 = vmatprep.subr.mxu0 %v3498_v58 }
 0x873   :  { %v3465_v12 = vpop.eup %3464 }
 0x874   :  { %2529 = vrot.lane.b32.xlu1 %v3465_v12, %s3500_s20  ;;  %v3467_v13 = vpop.eup %3466  ;;  %v2801_v12 = vld [vmem:[%s4367_s12 + $0x20] sm:$0xff] }
 0x875   :  { %3430 = vmatpush3.msra.mxu0 %v2801_v12 }
 0x876   :  { %3431 = vmatprep.subr.mxu0 %v3498_v58 }
 0x878   :  { %2527 = vrot.lane.b32.xlu1 %v3467_v13, %s3500_s20  ;;  %v2800_v13 = vld [vmem:[%s4367_s12 + $0x18] sm:$0xff] }
 0x879   :  { %3432 = vmatpush3.msra.mxu0 %v2800_v13 }
 0x87a   :  { %3433 = vmatprep.subr.mxu0 %v3498_v58 }
 0x87b   :  { %3434 = vmatpush3.msra.mxu0 %v2799_v14 }
 0x87c   :  { %3435 = vmatprep.subr.mxu0 %v3498_v58 }
 0x87d   :  { %3436 = vmatpush3.msra.mxu0 %v2798_v15 }
 0x87e   :  { %3437 = vmatprep.subr.mxu0 %v3498_v58 }
 0x87f   :  { %3438 = vmatpush3.msra.mxu0 %v2797_v16 }
 0x8e6   :  { %v2530_v19 = vpop.permute.xlu1 %2529 }
 0x8e7   :  { %v2538_v4 = vsel %vm1128_vm8, %v2536_v18, %v2530_v19  ;;  %v3040_v18 = vld [vmem:[%s4366_s11] ss:$0 sm:$0xff]  ;;  %s3503_s11 = smov [#allocation2]  }
 0x8e8   :  { %3394 = vmatpush3.msra.mxu1 %v2538_v4  ;;  %s2910_s12 = sshll.u32 %s3503_s11, 4  ;;  %s2911_s12 = int_to_ptr.vmem [resolvable:$true] %s2910_s12 }
 0x8e9   :  { %3395 = vmatprep.subr.mxu1 %v3498_v58  ;;  %p3477_p1 = scmp.lt.s32.totalorder %s2911_s12, %s2911_s12 }
 0x8ea   :  { %v2528_v7 = vpop.permute.xlu1 %2527 }
 0x8eb   :  { %v2537_v51 = vsel %vm1128_vm8, %v2535_v6, %v2528_v7  ;;  %v3041_v6 = vld [vmem:[%s4368_s13] ss:$0 sm:$0xff]  ;;  %s3472_s13 = scalar_lea.vmem %s2911_s12, 32 }
 0x8ec   :  { %3396 = vmatpush3.msra.mxu1 %v2537_v51  ;;  %p3473_p0 = scmp.ne.s32.totalorder %s2911_s12, %s3472_s13  ;;  %p3478_p2 = scmp.lt.s32.totalorder %s3472_s13, %s3472_s13 }
 0x8ed   :  { %3398 = vmatmul.mubr.msk.f32.vlgmr.msra.gmra.mxu1 %vm57_vm0, %v2539_v8  ;;  %3400 = vmatprep.subr.mxu1 %v3498_v58 }
 0x8ee   :  { %3401 = vmatpush3.msra.mxu1 %v2538_v4  ;;  %3404 = vmatprep.mubr.msk.f32.mxu1 %vm3502_vm9, %v3498_v58  ;;  %p3479_p3 = por %p3478_p2, %p3477_p1 }
 0x8ef   :  { %3402 = vmatprep.subr.mxu1 %v3498_v58 }
 0x8f0   :  { %3403 = vmatpush3.msra.mxu1 %v2537_v51  ;;  %p3480_p4 = pnand %p3479_p3, %p3473_p0 }
 0x8f1   :  { %3405 = vmatmul.mubr.msk.f32.vlgmr.msra.gmra.mxu1 %vm57_vm0, %v2613_v52  ;;  %3154 = vmatprep.subr.mxu1 %v2718_v9 }
 0x8f2   :  { %3155 = vmatpush3.msra.mxu1 %v2702_v10 }
 0x8f3   :  { %3156 = vmatprep.subr.mxu1 %v2717_v11 }
 0x8f4   :  { %3157 = vmatpush3.msra.mxu1 %v2701_v20 }
 0x8f5   :  { %3158 = vmatprep.subr.mxu1 %v2716_v21 }
 0x8f6   :  { %3159 = vmatpush3.msra.mxu1 %v2700_v22 }
 0x8f7   :  { %3160 = vmatprep.subr.mxu1 %v2715_v23 }
 0x8f8   :  { %3161 = vmatpush3.msra.mxu1 %v2699_v24 }
 0x8f9   :  { %3162 = vmatprep.subr.mxu1 %v2714_v25 }
 0x8fa   :  { %3163 = vmatpush3.msra.mxu1 %v2698_v26 }
 0x8fb   :  { %3164 = vmatprep.subr.mxu1 %v2713_v27 }
 0x8fc   :  { %3165 = vmatpush3.msra.mxu1 %v2697_v28 }
 0x8fd   :  { %3166 = vmatprep.subr.mxu1 %v2712_v29 }
 0x8fe   :  { %3167 = vmatpush3.msra.mxu1 %v2696_v30 }
 0x8ff   :  { %3168 = vmatprep.subr.mxu1 %v2711_v31 }
 0x900   :  { %3169 = vmatpush3.msra.mxu1 %v2695_v32 }
 0x901   :  { %3170 = vmatprep.subr.mxu1 %v2710_v33 }
 0x902   :  { %3171 = vmatpush3.msra.mxu1 %v2694_v34 }
 0x903   :  { %3172 = vmatprep.subr.mxu1 %v2709_v35 }
 0x904   :  { %3173 = vmatpush3.msra.mxu1 %v2693_v36 }
 0x905   :  { %3174 = vmatprep.subr.mxu1 %v2708_v37 }
 0x906   :  { %3175 = vmatpush3.msra.mxu1 %v2692_v38 }
 0x907   :  { %3176 = vmatprep.subr.mxu1 %v2707_v39 }
 0x908   :  { %3177 = vmatpush3.msra.mxu1 %v2691_v40 }
 0x909   :  { %3178 = vmatprep.subr.mxu1 %v2706_v41 }
 0x90a   :  { %3179 = vmatpush3.msra.mxu1 %v2690_v42 }
 0x90b   :  { %3180 = vmatprep.subr.mxu1 %v2705_v43 }
 0x90c   :  { %3181 = vmatpush3.msra.mxu1 %v2689_v44 }
 0x90d   :  { %3182 = vmatprep.subr.mxu1 %v2704_v45 }
 0x90e   :  { %3183 = vmatpush3.msra.mxu1 %v2688_v46 }
 0x90f   :  { %3184 = vmatprep.subr.mxu1 %v2703_v47 }
 0x910   :  { %3185 = vmatpush3.msra.mxu1 %v2687_v1 }
 0x9ad   :  { %v2609_v61 = vpop.f32.mrf.mxu1 }
 0x9af   :  { %v3399_v62 = vpop.f32.mrf.mxu1 }
 0x9b1   :  { %v2683_v63 = vpop.f32.mrf.mxu1 }
 0x9b2   :  { %2790 = vmatprep.mubr.f32.mxu1 %v2683_v63 }
 0x9b3   :  { %v3406_v2 = vpop.f32.mrf.mxu1  ;;  %2791 = vmatmul.mubr.f32.vlgmr.msra.gmra.mxu1 %v2609_v61 }
 0xa73   :  { %v3186_v17 = vpop.f32.mrf.mxu1 }
 0xa75   :  { %v3187_v19 = vpop.f32.mrf.mxu1 }
 0xa76   :  { %v3188_v3 = vadd.f32 %v3187_v19, %v3186_v17 }
 0xa78   :  { %v2793_v4 = vadd.f32 %v3188_v3, %v3040_v18 }
 0xa7a   :  { %v2796_v5 = vmax.f32 %v2793_v4, 0.0 }
 0xa7c   :  { %3440 = vmatmul.mubr.f32.vlgmr.msra.gmra.mxu0 %v2796_v5 }
 0xb3c   :  { %v2886_v7 = vpop.f32.mrf.mxu0 }
 0xb3d   :  { %v2887_v8 = vadd.f32 %v3041_v6, %v2886_v7 }
 0xb3e   :  { %v3441_v51 = vpop.f32.mrf.mxu0 }
 0xb3f   :  { %v2891_v58 = vsel %vm2890_vm10, %v2887_v8, -inf }
 0xb40   :  { %2892 = vmax.xlane.f32.xlu0 %v2891_v58 }
 0xbc9   :  { %v2893_v52 = vpop.xlane.xlu0 %2892 }
 0xbca   :  { %v2894_v9 = vsub.f32 %v2887_v8, %v2893_v52 }
 0xbcc   :  { %v2895_v10 = vmul.f32 1.442695, %v2894_v9 }
 0xbce   :  { %3468 = vpow2.f32 %v2895_v10 }
 0xbdb   :  { %v3469_v11 = vpop.eup %3468 }
 0xbdc   :  { %v2897_v20 = vsel %vm2890_vm10, %v3469_v11, 0.0 }
 0xbdd   :  { %2898 = vadd.xlane.f32.xlu1 %v2897_v20 }
 0xc66   :  { %v2899_v21 = vpop.xlane.xlu1 %2898 }
 0xc67   :  { %3470 = vlog2.f32 %v2899_v21 }
 0xc74   :  { %v3471_v22 = vpop.eup %3470 }
 0xc75   :  { %v2901_v23 = vmul.f32 0.6931472, %v3471_v22 }
 0xc77   :  { %v2902_v24 = vsub.f32 %v2894_v9, %v2901_v23 }
 0xc79   :  { %2903 = vst.msk [vmem:[#allocation2] sm:$0x3] %vm2890_vm10, %v2902_v24 }
 0xc7a   :  { %3483 = shalt.err (!%p3480_p4)
}
 0xc7b   :  { %2913 = dma.vmem_to_hbm [thread:$0]  %s2911_s12, 32, %s4369_s14, [#allocation3]  }
 0xc7c   :  { %3492 = dma.done.wait [#allocation3], 32  }
 0xc7d   :  { %3493 = vsyncadd [#allocation3], 4294967264 }
 0xc7e   :  { %2917 = vsyncpa [#allocation3], 1 }

</bundles_post_ra>
